<compile_context>
chip_gen: v7x
topology: tpu7x:2x2x1
jax: 0.10.0
libtpu: 0.0.40
codegen_flags: <defaults>
</compile_context>

<pallas_src>
from functools import partial

import numpy as np
import jax
import jax.numpy as jnp
from jax import lax
from jax.experimental import pallas as pl
from jax.experimental.pallas import tpu as pltpu


def _round_up(x, m):
    return ((x + m - 1) // m) * m


def _pick_chunk(t_run):
    """Pick (TT, T_pad): TT timesteps per unrolled chunk, T_pad total steps run.

    Avoids dead serial timesteps: every padded step is a full serial
    MXU+EUP iteration, so padding is minimized before anything else.
    """
    if t_run <= 64:
        return t_run, t_run            # single chunk, zero dead steps
    best = None
    for tt in range(8, 65):
        t_pad = _round_up(t_run, tt)
        key = (t_pad - t_run, abs(tt - 32))
        if best is None or key < best[0]:
            best = (key, tt, t_pad)
    return best[1], best[2]


def _lstm_chunk_kernel(x_ref, wih_ref, whh_ref, b_ref, out_ref,
                       xg_sc, h_sc, c_sc):
    """One grid step == TT LSTM timesteps.

    x_ref   : (TT*BP, E)    time-major input chunk, pre-flattened (no reshape)
    wih_ref : (E, 4*HP)     input->gate weights, gate cols 128-aligned, 0-padded
    whh_ref : (HP, 4*HP)    hidden->gate weights, rows/cols 0-padded
    b_ref   : (1, 4*HP)     b_ih + b_hh, 0-padded
    out_ref : (TT, BP, HP)  hidden states for this chunk (lane-dense stores)
    xg_sc   : (TT*BP, 4*HP) VMEM scratch: precomputed input projections
    h_sc/c_sc : (BP, HP)    VMEM carries, persist across grid steps
    """
    TT, BP, HP = out_ref.shape

    @pl.when(pl.program_id(0) == 0)
    def _():
        h_sc[...] = jnp.zeros_like(h_sc)
        c_sc[...] = jnp.zeros_like(c_sc)

    # Input projection for the whole chunk in one MXU matmul, off the serial
    # recurrent path: (TT*BP, E) @ (E, 4HP) + b.
    xg_sc[...] = (jnp.dot(x_ref[...], wih_ref[...],
                          preferred_element_type=jnp.float32)
                  + b_ref[...])

    def step(t, carry):
        h, c = carry
        off = pl.multiple_of(t * BP, BP)
        xg = xg_sc[pl.ds(off, BP), :]                              # (BP, 4HP)
        # W_hh is loop-invariant across the unrolled loop (stays resident in
        # VMEM); only the 8-row LHS changes per step.
        # TODO(synk): explicit matmul_push_rhs/acc_lhs/pop MXU RHS residency
        # not used, to stay portable across v5e/v6e/v7x MXU variants.
        gates = xg + jnp.dot(h, whh_ref[...],
                             preferred_element_type=jnp.float32)   # (BP, 4HP)
        # gate order i | f | g | o; each slice is a whole 128-lane block
        i = jax.nn.sigmoid(gates[:, 0 * HP:1 * HP])
        f = jax.nn.sigmoid(gates[:, 1 * HP:2 * HP])
        g = jnp.tanh(gates[:, 2 * HP:3 * HP])
        o = jax.nn.sigmoid(gates[:, 3 * HP:4 * HP])
        c_new = f * c + i * g
        h_new = o * jnp.tanh(c_new)
        out_ref[t] = h_new                                         # (8,128) vst
        return (h_new, c_new)

    h_fin, c_fin = lax.fori_loop(0, TT, step, (h_sc[...], c_sc[...]),
                                 unroll=True)
    h_sc[...] = h_fin
    c_sc[...] = c_fin


def _lstm_run(x_flat, wih_p, whh_p, bias_p, T_pad, TT, BP, HP):
    """x_flat: (T_pad*BP, E) f32 time-major-flattened.  Returns (T_pad,BP,HP)."""
    E = x_flat.shape[-1]
    return pl.pallas_call(
        _lstm_chunk_kernel,
        out_shape=jax.ShapeDtypeStruct((T_pad, BP, HP), jnp.float32),
        grid_spec=pltpu.PrefetchScalarGridSpec(
            num_scalar_prefetch=0,
            grid=(T_pad // TT,),
            in_specs=[
                pl.BlockSpec((TT * BP, E), lambda c: (c, 0)),       # x chunk
                pl.BlockSpec((E, 4 * HP), lambda c: (0, 0)),        # W_ih^T
                pl.BlockSpec((HP, 4 * HP), lambda c: (0, 0)),       # W_hh^T
                pl.BlockSpec((1, 4 * HP), lambda c: (0, 0)),        # bias
            ],
            out_specs=pl.BlockSpec((TT, BP, HP), lambda c: (c, 0, 0)),
            scratch_shapes=[
                pltpu.VMEM((TT * BP, 4 * HP), jnp.float32),         # xg
                pltpu.VMEM((BP, HP), jnp.float32),                  # h carry
                pltpu.VMEM((BP, HP), jnp.float32),                  # c carry
            ],
        ),
        compiler_params=pltpu.CompilerParams(
            dimension_semantics=("arbitrary",)),                    # recurrent
    )(x_flat, wih_p, whh_p, bias_p)


@partial(jax.jit,
         static_argnames=("B", "T_s", "T_q", "T_pad", "TT", "H", "HP"))
def _encode_pair(s_feat, q_feat, s_len, q_len, wih_p, whh_p, bias_p,
                 *, B, T_s, T_q, T_pad, TT, H, HP):
    """Runs BOTH s and q encodes in one kernel launch, fully fused under jit.

    Returns (s_out, s_mask, q_out, q_mask) matching pad_packed_sequence +
    make_mask for each branch.
    """
    E = s_feat.shape[-1]
    BP = _round_up(2 * B, 8)

    def prep(x):
        x = x[:, :min(x.shape[1], T_pad)].astype(jnp.float32)
        if x.shape[1] < T_pad:
            x = jnp.pad(x, ((0, 0), (0, T_pad - x.shape[1]), (0, 0)))
        return x

    x = jnp.concatenate([prep(s_feat), prep(q_feat)], axis=0)   # (2B,T_pad,E)
    if 2 * B < BP:
        x = jnp.pad(x, ((0, BP - 2 * B), (0, 0), (0, 0)))
    # time-major, pre-flattened for the kernel; XLA fuses this transpose /
    # reshape with the pad+concat above inside the jitted prologue.
    x_flat = jnp.transpose(x, (1, 0, 2)).reshape(T_pad * BP, E)

    out = _lstm_run(x_flat, wih_p, whh_p, bias_p, T_pad, TT, BP, HP)
    out_bth = jnp.transpose(out, (1, 0, 2))                     # (BP,T_pad,HP)

    def finish(raw, lens, t_max):
        # pad_packed_sequence: positions t >= len are exactly zero.  Rows are
        # independent in the recurrence, so valid positions are identical to
        # the packed-LSTM result; padded positions are zeroed here (fused).
        lens = lens.astype(jnp.int32)
        valid = jnp.arange(t_max, dtype=jnp.int32)[None, :] < lens[:, None]
        out_z = jnp.where(valid[..., None], raw, 0.0)
        mask = jnp.sum(jnp.abs(out_z), axis=-1) == 0            # make_mask
        return out_z, mask

    s_out, s_mask = finish(out_bth[0:B, :T_s, :H], s_len, T_s)
    q_out, q_mask = finish(out_bth[B:2 * B, :T_q, :H], q_len, T_q)
    return s_out, s_mask, q_out, q_mask


class LangModulePallas:
    """JAX/Pallas port of LangModule (use_bert=False, use_bidir=False, 1 layer)."""

    def __init__(self, emb_size=32, hidden_size=64, seed=0):
        self.emb_size = emb_size
        self.hidden_size = hidden_size
        H, E = hidden_size, emb_size
        HP = _round_up(H, 128)          # 128-lane aligned gate blocks
        self.HP = HP

        k = 1.0 / np.sqrt(H)            # PyTorch LSTM default init
        key = jax.random.PRNGKey(seed)
        k0, k1, k2, k3 = jax.random.split(key, 4)
        self.w_ih = jax.random.uniform(k0, (4 * H, E), jnp.float32, -k, k)
        self.w_hh = jax.random.uniform(k1, (4 * H, H), jnp.float32, -k, k)
        self.b_ih = jax.random.uniform(k2, (4 * H,), jnp.float32, -k, k)
        self.b_hh = jax.random.uniform(k3, (4 * H,), jnp.float32, -k, k)

        # Kernel layouts: transposed, each gate's H columns placed at a
        # 128-lane-aligned offset g*HP; everything else zero (padded hidden
        # columns provably stay exactly zero through the recurrence).
        wih_t = np.asarray(self.w_ih).T                 # (E, 4H)
        whh_t = np.asarray(self.w_hh).T                 # (H, 4H)
        bias = np.asarray(self.b_ih + self.b_hh)        # (4H,)
        wih_p = np.zeros((E, 4 * HP), np.float32)
        whh_p = np.zeros((HP, 4 * HP), np.float32)
        b_p = np.zeros((1, 4 * HP), np.float32)
        for g in range(4):
            wih_p[:, g * HP:g * HP + H] = wih_t[:, g * H:(g + 1) * H]
            whh_p[:H, g * HP:g * HP + H] = whh_t[:, g * H:(g + 1) * H]
            b_p[0, g * HP:g * HP + H] = bias[g * H:(g + 1) * H]
        self._wih = jnp.asarray(wih_p)
        self._whh = jnp.asarray(whh_p)
        self._bias = jnp.asarray(b_p)

    def forward(self, data_dict):
        # word_drop (nn.Dropout) is identity at inference time.
        # TODO(synk): training-mode dropout (pdrop=0.1) not implemented.
        s_len = np.asarray(data_dict['s_len'])
        q_len = np.asarray(data_dict['q_len'])
        B = int(data_dict['s_feat'].shape[0])
        T_s = int(s_len.max())
        T_q = int(q_len.max())
        TT, T_pad = _pick_chunk(max(T_s, T_q))

        s_out, s_mask, q_out, q_mask = _encode_pair(
            data_dict['s_feat'], data_dict['q_feat'],
            jnp.asarray(s_len, jnp.int32), jnp.asarray(q_len, jnp.int32),
            self._wih, self._whh, self._bias,
            B=B, T_s=T_s, T_q=T_q, T_pad=T_pad, TT=TT,
            H=self.hidden_size, HP=self.HP)
        data_dict['s_out'] = s_out
        data_dict['q_out'] = q_out
        data_dict['s_mask'] = s_mask
        data_dict['q_mask'] = q_mask
        return data_dict


def _lstm_reference(x_bte, lengths, w_ih, w_hh, b_ih, b_hh):
    """Pure-JAX packed-LSTM reference (lax.scan) for correctness checking."""
    B, T, E = x_bte.shape
    H = w_hh.shape[1]
    T_max = int(np.max(np.asarray(lengths)))
    lens = jnp.asarray(np.asarray(lengths), jnp.int32)
    x_tbe = jnp.transpose(x_bte[:, :T_max], (1, 0, 2)).astype(jnp.float32)

    def step(carry, xt):
        h, c, t = carry
        gates = xt @ w_ih.T + h @ w_hh.T + b_ih + b_hh
        i, f, g, o = jnp.split(gates, 4, axis=-1)
        i, f, o = jax.nn.sigmoid(i), jax.nn.sigmoid(f), jax.nn.sigmoid(o)
        g = jnp.tanh(g)
        c_new = f * c + i * g
        h_new = o * jnp.tanh(c_new)
        valid = (lens > t)[:, None]
        c2 = jnp.where(valid, c_new, c)
        h2 = jnp.where(valid, h_new, h)
        out = jnp.where(valid, h_new, 0.0)
        return (h2, c2, t + 1), out

    init = (jnp.zeros((B, H), jnp.float32), jnp.zeros((B, H), jnp.float32), 0)
    _, outs = lax.scan(step, init, x_tbe)
    out_bth = jnp.transpose(outs, (1, 0, 2))
    mask = jnp.sum(jnp.abs(out_bth), axis=-1) == 0.0
    return out_bth, mask


if __name__ == "__main__":
    B, E, H = 2, 32, 64
    Ts, Tq = 10, 8

    key = jax.random.PRNGKey(0)
    ks, kq = jax.random.split(key)
    s_feat = jax.random.normal(ks, (B, Ts, E), jnp.float32)
    q_feat = jax.random.normal(kq, (B, Tq, E), jnp.float32)
    s_len = np.array([10, 6], dtype=np.int32)
    q_len = np.array([8, 5], dtype=np.int32)

    module = LangModulePallas(emb_size=E, hidden_size=H, seed=0)
    data_dict = {'s_feat': s_feat, 'q_feat': q_feat,
                 's_len': s_len, 'q_len': q_len}
    data_dict = module.forward(data_dict)
    jax.block_until_ready((data_dict['s_out'], data_dict['q_out'],
                           data_dict['s_mask'], data_dict['q_mask']))

    # correctness check against a pure-JAX packed-LSTM reference
    s_ref, s_mask_ref = _lstm_reference(s_feat, s_len, module.w_ih, module.w_hh,
                                        module.b_ih, module.b_hh)
    q_ref, q_mask_ref = _lstm_reference(q_feat, q_len, module.w_ih, module.w_hh,
                                        module.b_ih, module.b_hh)
    np.testing.assert_allclose(np.asarray(data_dict['s_out']), np.asarray(s_ref),
                               rtol=1e-5, atol=1e-5)
    np.testing.assert_allclose(np.asarray(data_dict['q_out']), np.asarray(q_ref),
                               rtol=1e-5, atol=1e-5)
    assert np.array_equal(np.asarray(data_dict['s_mask']), np.asarray(s_mask_ref))
    assert np.array_equal(np.asarray(data_dict['q_mask']), np.asarray(q_mask_ref))

    print("KERNEL_OK")
</pallas_src>

<mosaic_0001>
module attributes {stable_mosaic.version = 11 : i64} {
  func.func @_lstm_chunk_kernel(%arg0: i32, %arg1: memref<80x32xf32, #tpu.memory_space<vmem>>, %arg2: memref<32x512xf32, #tpu.memory_space<vmem>>, %arg3: memref<128x512xf32, #tpu.memory_space<vmem>>, %arg4: memref<1x512xf32, #tpu.memory_space<vmem>>, %arg5: memref<10x8x128xf32, #tpu.memory_space<vmem>>, %arg6: memref<80x512xf32, #tpu.memory_space<vmem>>, %arg7: memref<8x128xf32, #tpu.memory_space<vmem>>, %arg8: memref<8x128xf32, #tpu.memory_space<vmem>>) attributes {dimension_semantics = [#tpu.dimension_semantics<arbitrary>], iteration_bounds = array<i64: 1>, scalar_prefetch = 0 : i64, scratch_operands = 3 : i64, tpu.core_type = #tpu.core_type<tc>, window_params = [{transform_indices = @transform_0, window_bounds = array<i64: 80, 32>}, {pipeline_mode = #tpu.pipeline_mode<synchronous>, transform_indices = @transform_1, window_bounds = array<i64: 32, 512>}, {pipeline_mode = #tpu.pipeline_mode<synchronous>, transform_indices = @transform_2, window_bounds = array<i64: 128, 512>}, {pipeline_mode = #tpu.pipeline_mode<synchronous>, transform_indices = @transform_3, window_bounds = array<i64: 1, 512>}, {transform_indices = @transform_4, window_bounds = array<i64: 10, 8, 128>}]} {
    %c0_i32 = arith.constant 0 : i32
    %0 = arith.cmpi eq, %arg0, %c0_i32 : i32
    %1 = arith.extui %0 : i1 to i32
    %c0_i32_0 = arith.constant 0 : i32
    %2 = arith.cmpi ne, %1, %c0_i32_0 : i32
    scf.if %2 {
      %cst_117 = arith.constant 0.000000e+00 : f32
      %374 = vector.broadcast %cst_117 : f32 to vector<8x128xf32>
      %c0_118 = arith.constant 0 : index
      %c0_119 = arith.constant 0 : index
      %375 = vector.load %arg7[%c0_118, %c0_119] : memref<8x128xf32, #tpu.memory_space<vmem>>, vector<8x128xf32>
      tpu.vector_store %arg7[%c0_118, %c0_119], %374 {strides = array<i32>} : memref<8x128xf32, #tpu.memory_space<vmem>>, vector<8x128xf32>,
      %cst_120 = arith.constant 0.000000e+00 : f32
      %376 = vector.broadcast %cst_120 : f32 to vector<8x128xf32>
      %c0_121 = arith.constant 0 : index
      %c0_122 = arith.constant 0 : index
      %377 = vector.load %arg8[%c0_121, %c0_122] : memref<8x128xf32, #tpu.memory_space<vmem>>, vector<8x128xf32>
      tpu.vector_store %arg8[%c0_121, %c0_122], %376 {strides = array<i32>} : memref<8x128xf32, #tpu.memory_space<vmem>>, vector<8x128xf32>,
    } else {
    }
    %c0 = arith.constant 0 : index
    %c0_1 = arith.constant 0 : index
    %3 = vector.load %arg1[%c0, %c0_1] : memref<80x32xf32, #tpu.memory_space<vmem>>, vector<80x32xf32>
    %c0_2 = arith.constant 0 : index
    %c0_3 = arith.constant 0 : index
    %4 = vector.load %arg2[%c0_2, %c0_3] : memref<32x512xf32, #tpu.memory_space<vmem>>, vector<32x512xf32>
    %cst = arith.constant dense<0.000000e+00> : vector<80x512xf32>
    %5 = tpu.matmul %3, %4, %cst {dimension_numbers = #tpu.dot_dimension_numbers<[1], [0], [0], [1], [0, 0, 1, 1], [], []>} : vector<80x32xf32>, vector<32x512xf32>, vector<80x512xf32> -> vector<80x512xf32>
    %c0_4 = arith.constant 0 : index
    %c0_5 = arith.constant 0 : index
    %6 = vector.load %arg4[%c0_4, %c0_5] : memref<1x512xf32, #tpu.memory_space<vmem>>, vector<1x512xf32>
    %7 = vector.broadcast %6 : vector<1x512xf32> to vector<80x512xf32>
    %8 = arith.addf %5, %7 : vector<80x512xf32>
    %c0_6 = arith.constant 0 : index
    %c0_7 = arith.constant 0 : index
    %9 = vector.load %arg6[%c0_6, %c0_7] : memref<80x512xf32, #tpu.memory_space<vmem>>, vector<80x512xf32>
    tpu.vector_store %arg6[%c0_6, %c0_7], %8 {strides = array<i32>} : memref<80x512xf32, #tpu.memory_space<vmem>>, vector<80x512xf32>,
    %c0_8 = arith.constant 0 : index
    %c0_9 = arith.constant 0 : index
    %10 = vector.load %arg7[%c0_8, %c0_9] : memref<8x128xf32, #tpu.memory_space<vmem>>, vector<8x128xf32>
    %c0_10 = arith.constant 0 : index
    %c0_11 = arith.constant 0 : index
    %11 = vector.load %arg8[%c0_10, %c0_11] : memref<8x128xf32, #tpu.memory_space<vmem>>, vector<8x128xf32>
    %c0_i32_12 = arith.constant 0 : i32
    %c8_i32 = arith.constant 8 : i32
    %12 = arith.muli %c0_i32_12, %c8_i32 : i32
    %13 = tpu.assume_multiple %12, 8 : i32
    %14 = arith.index_cast %13 : i32 to index
    %c0_13 = arith.constant 0 : index
    %15 = vector.load %arg6[%14, %c0_13] : memref<80x512xf32, #tpu.memory_space<vmem>>, vector<8x512xf32>
    %c0_14 = arith.constant 0 : index
    %c0_15 = arith.constant 0 : index
    %16 = vector.load %arg3[%c0_14, %c0_15] : memref<128x512xf32, #tpu.memory_space<vmem>>, vector<128x512xf32>
    %cst_16 = arith.constant dense<0.000000e+00> : vector<8x512xf32>
    %17 = tpu.matmul %10, %16, %cst_16 {dimension_numbers = #tpu.dot_dimension_numbers<[1], [0], [0], [1], [0, 0, 1, 1], [], []>} : vector<8x128xf32>, vector<128x512xf32>, vector<8x512xf32> -> vector<8x512xf32>
    %18 = arith.addf %15, %17 : vector<8x512xf32>
    %19 = vector.extract_strided_slice %18 {offsets = [0, 0], sizes = [8, 128], strides = [1, 1]} : vector<8x512xf32> to vector<8x128xf32>
    %20 = arith.negf %19 : vector<8x128xf32>
    %21 = math.exp %20 : vector<8x128xf32>
    %cst_17 = arith.constant 1.000000e+00 : f32
    %22 = vector.broadcast %cst_17 : f32 to vector<8x128xf32>
    %23 = arith.addf %22, %21 : vector<8x128xf32>
    %24 = arith.divf %22, %23 : vector<8x128xf32>
    %25 = vector.extract_strided_slice %18 {offsets = [0, 128], sizes = [8, 128], strides = [1, 1]} : vector<8x512xf32> to vector<8x128xf32>
    %26 = arith.negf %25 : vector<8x128xf32>
    %27 = math.exp %26 : vector<8x128xf32>
    %cst_18 = arith.constant 1.000000e+00 : f32
    %28 = vector.broadcast %cst_18 : f32 to vector<8x128xf32>
    %29 = arith.addf %28, %27 : vector<8x128xf32>
    %30 = arith.divf %28, %29 : vector<8x128xf32>
    %31 = vector.extract_strided_slice %18 {offsets = [0, 256], sizes = [8, 128], strides = [1, 1]} : vector<8x512xf32> to vector<8x128xf32>
    %32 = math.tanh %31 : vector<8x128xf32>
    %33 = vector.extract_strided_slice %18 {offsets = [0, 384], sizes = [8, 128], strides = [1, 1]} : vector<8x512xf32> to vector<8x128xf32>
    %34 = arith.negf %33 : vector<8x128xf32>
    %35 = math.exp %34 : vector<8x128xf32>
    %cst_19 = arith.constant 1.000000e+00 : f32
    %36 = vector.broadcast %cst_19 : f32 to vector<8x128xf32>
    %37 = arith.addf %36, %35 : vector<8x128xf32>
    %38 = arith.divf %36, %37 : vector<8x128xf32>
    %39 = arith.mulf %30, %11 : vector<8x128xf32>
    %40 = arith.mulf %24, %32 : vector<8x128xf32>
    %41 = arith.addf %39, %40 : vector<8x128xf32>
    %42 = math.tanh %41 : vector<8x128xf32>
    %43 = arith.mulf %38, %42 : vector<8x128xf32>
    %44 = arith.index_cast %c0_i32_12 : i32 to index
    %c0_20 = arith.constant 0 : index
    %c0_21 = arith.constant 0 : index
    %45 = vector.load %arg5[%44, %c0_20, %c0_21] : memref<10x8x128xf32, #tpu.memory_space<vmem>>, vector<1x8x128xf32>
    %46 = vector.shape_cast %45 : vector<1x8x128xf32> to vector<8x128xf32>
    %47 = vector.shape_cast %43 : vector<8x128xf32> to vector<1x8x128xf32>
    tpu.vector_store %arg5[%44, %c0_20, %c0_21], %47 {strides = array<i32>} : memref<10x8x128xf32, #tpu.memory_space<vmem>>, vector<1x8x128xf32>,
    %c1_i32 = arith.constant 1 : i32
    %c8_i32_22 = arith.constant 8 : i32
    %48 = arith.muli %c1_i32, %c8_i32_22 : i32
    %49 = tpu.assume_multiple %48, 8 : i32
    %50 = arith.index_cast %49 : i32 to index
    %c0_23 = arith.constant 0 : index
    %51 = vector.load %arg6[%50, %c0_23] : memref<80x512xf32, #tpu.memory_space<vmem>>, vector<8x512xf32>
    %c0_24 = arith.constant 0 : index
    %c0_25 = arith.constant 0 : index
    %52 = vector.load %arg3[%c0_24, %c0_25] : memref<128x512xf32, #tpu.memory_space<vmem>>, vector<128x512xf32>
    %cst_26 = arith.constant dense<0.000000e+00> : vector<8x512xf32>
    %53 = tpu.matmul %43, %52, %cst_26 {dimension_numbers = #tpu.dot_dimension_numbers<[1], [0], [0], [1], [0, 0, 1, 1], [], []>} : vector<8x128xf32>, vector<128x512xf32>, vector<8x512xf32> -> vector<8x512xf32>
    %54 = arith.addf %51, %53 : vector<8x512xf32>
    %55 = vector.extract_strided_slice %54 {offsets = [0, 0], sizes = [8, 128], strides = [1, 1]} : vector<8x512xf32> to vector<8x128xf32>
    %56 = arith.negf %55 : vector<8x128xf32>
    %57 = math.exp %56 : vector<8x128xf32>
    %cst_27 = arith.constant 1.000000e+00 : f32
    %58 = vector.broadcast %cst_27 : f32 to vector<8x128xf32>
    %59 = arith.addf %58, %57 : vector<8x128xf32>
    %60 = arith.divf %58, %59 : vector<8x128xf32>
    %61 = vector.extract_strided_slice %54 {offsets = [0, 128], sizes = [8, 128], strides = [1, 1]} : vector<8x512xf32> to vector<8x128xf32>
    %62 = arith.negf %61 : vector<8x128xf32>
    %63 = math.exp %62 : vector<8x128xf32>
    %cst_28 = arith.constant 1.000000e+00 : f32
    %64 = vector.broadcast %cst_28 : f32 to vector<8x128xf32>
    %65 = arith.addf %64, %63 : vector<8x128xf32>
    %66 = arith.divf %64, %65 : vector<8x128xf32>
    %67 = vector.extract_strided_slice %54 {offsets = [0, 256], sizes = [8, 128], strides = [1, 1]} : vector<8x512xf32> to vector<8x128xf32>
    %68 = math.tanh %67 : vector<8x128xf32>
    %69 = vector.extract_strided_slice %54 {offsets = [0, 384], sizes = [8, 128], strides = [1, 1]} : vector<8x512xf32> to vector<8x128xf32>
    %70 = arith.negf %69 : vector<8x128xf32>
    %71 = math.exp %70 : vector<8x128xf32>
    %cst_29 = arith.constant 1.000000e+00 : f32
    %72 = vector.broadcast %cst_29 : f32 to vector<8x128xf32>
    %73 = arith.addf %72, %71 : vector<8x128xf32>
    %74 = arith.divf %72, %73 : vector<8x128xf32>
    %75 = arith.mulf %66, %41 : vector<8x128xf32>
    %76 = arith.mulf %60, %68 : vector<8x128xf32>
    %77 = arith.addf %75, %76 : vector<8x128xf32>
    %78 = math.tanh %77 : vector<8x128xf32>
    %79 = arith.mulf %74, %78 : vector<8x128xf32>
    %80 = arith.index_cast %c1_i32 : i32 to index
    %c0_30 = arith.constant 0 : index
    %c0_31 = arith.constant 0 : index
    %81 = vector.load %arg5[%80, %c0_30, %c0_31] : memref<10x8x128xf32, #tpu.memory_space<vmem>>, vector<1x8x128xf32>
    %82 = vector.shape_cast %81 : vector<1x8x128xf32> to vector<8x128xf32>
    %83 = vector.shape_cast %79 : vector<8x128xf32> to vector<1x8x128xf32>
    tpu.vector_store %arg5[%80, %c0_30, %c0_31], %83 {strides = array<i32>} : memref<10x8x128xf32, #tpu.memory_space<vmem>>, vector<1x8x128xf32>,
    %c2_i32 = arith.constant 2 : i32
    %c8_i32_32 = arith.constant 8 : i32
    %84 = arith.muli %c2_i32, %c8_i32_32 : i32
    %85 = tpu.assume_multiple %84, 8 : i32
    %86 = arith.index_cast %85 : i32 to index
    %c0_33 = arith.constant 0 : index
    %87 = vector.load %arg6[%86, %c0_33] : memref<80x512xf32, #tpu.memory_space<vmem>>, vector<8x512xf32>
    %c0_34 = arith.constant 0 : index
    %c0_35 = arith.constant 0 : index
    %88 = vector.load %arg3[%c0_34, %c0_35] : memref<128x512xf32, #tpu.memory_space<vmem>>, vector<128x512xf32>
    %cst_36 = arith.constant dense<0.000000e+00> : vector<8x512xf32>
    %89 = tpu.matmul %79, %88, %cst_36 {dimension_numbers = #tpu.dot_dimension_numbers<[1], [0], [0], [1], [0, 0, 1, 1], [], []>} : vector<8x128xf32>, vector<128x512xf32>, vector<8x512xf32> -> vector<8x512xf32>
    %90 = arith.addf %87, %89 : vector<8x512xf32>
    %91 = vector.extract_strided_slice %90 {offsets = [0, 0], sizes = [8, 128], strides = [1, 1]} : vector<8x512xf32> to vector<8x128xf32>
    %92 = arith.negf %91 : vector<8x128xf32>
    %93 = math.exp %92 : vector<8x128xf32>
    %cst_37 = arith.constant 1.000000e+00 : f32
    %94 = vector.broadcast %cst_37 : f32 to vector<8x128xf32>
    %95 = arith.addf %94, %93 : vector<8x128xf32>
    %96 = arith.divf %94, %95 : vector<8x128xf32>
    %97 = vector.extract_strided_slice %90 {offsets = [0, 128], sizes = [8, 128], strides = [1, 1]} : vector<8x512xf32> to vector<8x128xf32>
    %98 = arith.negf %97 : vector<8x128xf32>
    %99 = math.exp %98 : vector<8x128xf32>
    %cst_38 = arith.constant 1.000000e+00 : f32
    %100 = vector.broadcast %cst_38 : f32 to vector<8x128xf32>
    %101 = arith.addf %100, %99 : vector<8x128xf32>
    %102 = arith.divf %100, %101 : vector<8x128xf32>
    %103 = vector.extract_strided_slice %90 {offsets = [0, 256], sizes = [8, 128], strides = [1, 1]} : vector<8x512xf32> to vector<8x128xf32>
    %104 = math.tanh %103 : vector<8x128xf32>
    %105 = vector.extract_strided_slice %90 {offsets = [0, 384], sizes = [8, 128], strides = [1, 1]} : vector<8x512xf32> to vector<8x128xf32>
    %106 = arith.negf %105 : vector<8x128xf32>
    %107 = math.exp %106 : vector<8x128xf32>
    %cst_39 = arith.constant 1.000000e+00 : f32
    %108 = vector.broadcast %cst_39 : f32 to vector<8x128xf32>
    %109 = arith.addf %108, %107 : vector<8x128xf32>
    %110 = arith.divf %108, %109 : vector<8x128xf32>
    %111 = arith.mulf %102, %77 : vector<8x128xf32>
    %112 = arith.mulf %96, %104 : vector<8x128xf32>
    %113 = arith.addf %111, %112 : vector<8x128xf32>
    %114 = math.tanh %113 : vector<8x128xf32>
    %115 = arith.mulf %110, %114 : vector<8x128xf32>
    %116 = arith.index_cast %c2_i32 : i32 to index
    %c0_40 = arith.constant 0 : index
    %c0_41 = arith.constant 0 : index
    %117 = vector.load %arg5[%116, %c0_40, %c0_41] : memref<10x8x128xf32, #tpu.memory_space<vmem>>, vector<1x8x128xf32>
    %118 = vector.shape_cast %117 : vector<1x8x128xf32> to vector<8x128xf32>
    %119 = vector.shape_cast %115 : vector<8x128xf32> to vector<1x8x128xf32>
    tpu.vector_store %arg5[%116, %c0_40, %c0_41], %119 {strides = array<i32>} : memref<10x8x128xf32, #tpu.memory_space<vmem>>, vector<1x8x128xf32>,
    %c3_i32 = arith.constant 3 : i32
    %c8_i32_42 = arith.constant 8 : i32
    %120 = arith.muli %c3_i32, %c8_i32_42 : i32
    %121 = tpu.assume_multiple %120, 8 : i32
    %122 = arith.index_cast %121 : i32 to index
    %c0_43 = arith.constant 0 : index
    %123 = vector.load %arg6[%122, %c0_43] : memref<80x512xf32, #tpu.memory_space<vmem>>, vector<8x512xf32>
    %c0_44 = arith.constant 0 : index
    %c0_45 = arith.constant 0 : index
    %124 = vector.load %arg3[%c0_44, %c0_45] : memref<128x512xf32, #tpu.memory_space<vmem>>, vector<128x512xf32>
    %cst_46 = arith.constant dense<0.000000e+00> : vector<8x512xf32>
    %125 = tpu.matmul %115, %124, %cst_46 {dimension_numbers = #tpu.dot_dimension_numbers<[1], [0], [0], [1], [0, 0, 1, 1], [], []>} : vector<8x128xf32>, vector<128x512xf32>, vector<8x512xf32> -> vector<8x512xf32>
    %126 = arith.addf %123, %125 : vector<8x512xf32>
    %127 = vector.extract_strided_slice %126 {offsets = [0, 0], sizes = [8, 128], strides = [1, 1]} : vector<8x512xf32> to vector<8x128xf32>
    %128 = arith.negf %127 : vector<8x128xf32>
    %129 = math.exp %128 : vector<8x128xf32>
    %cst_47 = arith.constant 1.000000e+00 : f32
    %130 = vector.broadcast %cst_47 : f32 to vector<8x128xf32>
    %131 = arith.addf %130, %129 : vector<8x128xf32>
    %132 = arith.divf %130, %131 : vector<8x128xf32>
    %133 = vector.extract_strided_slice %126 {offsets = [0, 128], sizes = [8, 128], strides = [1, 1]} : vector<8x512xf32> to vector<8x128xf32>
    %134 = arith.negf %133 : vector<8x128xf32>
    %135 = math.exp %134 : vector<8x128xf32>
    %cst_48 = arith.constant 1.000000e+00 : f32
    %136 = vector.broadcast %cst_48 : f32 to vector<8x128xf32>
    %137 = arith.addf %136, %135 : vector<8x128xf32>
    %138 = arith.divf %136, %137 : vector<8x128xf32>
    %139 = vector.extract_strided_slice %126 {offsets = [0, 256], sizes = [8, 128], strides = [1, 1]} : vector<8x512xf32> to vector<8x128xf32>
    %140 = math.tanh %139 : vector<8x128xf32>
    %141 = vector.extract_strided_slice %126 {offsets = [0, 384], sizes = [8, 128], strides = [1, 1]} : vector<8x512xf32> to vector<8x128xf32>
    %142 = arith.negf %141 : vector<8x128xf32>
    %143 = math.exp %142 : vector<8x128xf32>
    %cst_49 = arith.constant 1.000000e+00 : f32
    %144 = vector.broadcast %cst_49 : f32 to vector<8x128xf32>
    %145 = arith.addf %144, %143 : vector<8x128xf32>
    %146 = arith.divf %144, %145 : vector<8x128xf32>
    %147 = arith.mulf %138, %113 : vector<8x128xf32>
    %148 = arith.mulf %132, %140 : vector<8x128xf32>
    %149 = arith.addf %147, %148 : vector<8x128xf32>
    %150 = math.tanh %149 : vector<8x128xf32>
    %151 = arith.mulf %146, %150 : vector<8x128xf32>
    %152 = arith.index_cast %c3_i32 : i32 to index
    %c0_50 = arith.constant 0 : index
    %c0_51 = arith.constant 0 : index
    %153 = vector.load %arg5[%152, %c0_50, %c0_51] : memref<10x8x128xf32, #tpu.memory_space<vmem>>, vector<1x8x128xf32>
    %154 = vector.shape_cast %153 : vector<1x8x128xf32> to vector<8x128xf32>
    %155 = vector.shape_cast %151 : vector<8x128xf32> to vector<1x8x128xf32>
    tpu.vector_store %arg5[%152, %c0_50, %c0_51], %155 {strides = array<i32>} : memref<10x8x128xf32, #tpu.memory_space<vmem>>, vector<1x8x128xf32>,
    %c4_i32 = arith.constant 4 : i32
    %c8_i32_52 = arith.constant 8 : i32
    %156 = arith.muli %c4_i32, %c8_i32_52 : i32
    %157 = tpu.assume_multiple %156, 8 : i32
    %158 = arith.index_cast %157 : i32 to index
    %c0_53 = arith.constant 0 : index
    %159 = vector.load %arg6[%158, %c0_53] : memref<80x512xf32, #tpu.memory_space<vmem>>, vector<8x512xf32>
    %c0_54 = arith.constant 0 : index
    %c0_55 = arith.constant 0 : index
    %160 = vector.load %arg3[%c0_54, %c0_55] : memref<128x512xf32, #tpu.memory_space<vmem>>, vector<128x512xf32>
    %cst_56 = arith.constant dense<0.000000e+00> : vector<8x512xf32>
    %161 = tpu.matmul %151, %160, %cst_56 {dimension_numbers = #tpu.dot_dimension_numbers<[1], [0], [0], [1], [0, 0, 1, 1], [], []>} : vector<8x128xf32>, vector<128x512xf32>, vector<8x512xf32> -> vector<8x512xf32>
    %162 = arith.addf %159, %161 : vector<8x512xf32>
    %163 = vector.extract_strided_slice %162 {offsets = [0, 0], sizes = [8, 128], strides = [1, 1]} : vector<8x512xf32> to vector<8x128xf32>
    %164 = arith.negf %163 : vector<8x128xf32>
    %165 = math.exp %164 : vector<8x128xf32>
    %cst_57 = arith.constant 1.000000e+00 : f32
    %166 = vector.broadcast %cst_57 : f32 to vector<8x128xf32>
    %167 = arith.addf %166, %165 : vector<8x128xf32>
    %168 = arith.divf %166, %167 : vector<8x128xf32>
    %169 = vector.extract_strided_slice %162 {offsets = [0, 128], sizes = [8, 128], strides = [1, 1]} : vector<8x512xf32> to vector<8x128xf32>
    %170 = arith.negf %169 : vector<8x128xf32>
    %171 = math.exp %170 : vector<8x128xf32>
    %cst_58 = arith.constant 1.000000e+00 : f32
    %172 = vector.broadcast %cst_58 : f32 to vector<8x128xf32>
    %173 = arith.addf %172, %171 : vector<8x128xf32>
    %174 = arith.divf %172, %173 : vector<8x128xf32>
    %175 = vector.extract_strided_slice %162 {offsets = [0, 256], sizes = [8, 128], strides = [1, 1]} : vector<8x512xf32> to vector<8x128xf32>
    %176 = math.tanh %175 : vector<8x128xf32>
    %177 = vector.extract_strided_slice %162 {offsets = [0, 384], sizes = [8, 128], strides = [1, 1]} : vector<8x512xf32> to vector<8x128xf32>
    %178 = arith.negf %177 : vector<8x128xf32>
    %179 = math.exp %178 : vector<8x128xf32>
    %cst_59 = arith.constant 1.000000e+00 : f32
    %180 = vector.broadcast %cst_59 : f32 to vector<8x128xf32>
    %181 = arith.addf %180, %179 : vector<8x128xf32>
    %182 = arith.divf %180, %181 : vector<8x128xf32>
    %183 = arith.mulf %174, %149 : vector<8x128xf32>
    %184 = arith.mulf %168, %176 : vector<8x128xf32>
    %185 = arith.addf %183, %184 : vector<8x128xf32>
    %186 = math.tanh %185 : vector<8x128xf32>
    %187 = arith.mulf %182, %186 : vector<8x128xf32>
    %188 = arith.index_cast %c4_i32 : i32 to index
    %c0_60 = arith.constant 0 : index
    %c0_61 = arith.constant 0 : index
    %189 = vector.load %arg5[%188, %c0_60, %c0_61] : memref<10x8x128xf32, #tpu.memory_space<vmem>>, vector<1x8x128xf32>
    %190 = vector.shape_cast %189 : vector<1x8x128xf32> to vector<8x128xf32>
    %191 = vector.shape_cast %187 : vector<8x128xf32> to vector<1x8x128xf32>
    tpu.vector_store %arg5[%188, %c0_60, %c0_61], %191 {strides = array<i32>} : memref<10x8x128xf32, #tpu.memory_space<vmem>>, vector<1x8x128xf32>,
    %c5_i32 = arith.constant 5 : i32
    %c8_i32_62 = arith.constant 8 : i32
    %192 = arith.muli %c5_i32, %c8_i32_62 : i32
    %193 = tpu.assume_multiple %192, 8 : i32
    %194 = arith.index_cast %193 : i32 to index
    %c0_63 = arith.constant 0 : index
    %195 = vector.load %arg6[%194, %c0_63] : memref<80x512xf32, #tpu.memory_space<vmem>>, vector<8x512xf32>
    %c0_64 = arith.constant 0 : index
    %c0_65 = arith.constant 0 : index
    %196 = vector.load %arg3[%c0_64, %c0_65] : memref<128x512xf32, #tpu.memory_space<vmem>>, vector<128x512xf32>
    %cst_66 = arith.constant dense<0.000000e+00> : vector<8x512xf32>
    %197 = tpu.matmul %187, %196, %cst_66 {dimension_numbers = #tpu.dot_dimension_numbers<[1], [0], [0], [1], [0, 0, 1, 1], [], []>} : vector<8x128xf32>, vector<128x512xf32>, vector<8x512xf32> -> vector<8x512xf32>
    %198 = arith.addf %195, %197 : vector<8x512xf32>
    %199 = vector.extract_strided_slice %198 {offsets = [0, 0], sizes = [8, 128], strides = [1, 1]} : vector<8x512xf32> to vector<8x128xf32>
    %200 = arith.negf %199 : vector<8x128xf32>
    %201 = math.exp %200 : vector<8x128xf32>
    %cst_67 = arith.constant 1.000000e+00 : f32
    %202 = vector.broadcast %cst_67 : f32 to vector<8x128xf32>
    %203 = arith.addf %202, %201 : vector<8x128xf32>
    %204 = arith.divf %202, %203 : vector<8x128xf32>
    %205 = vector.extract_strided_slice %198 {offsets = [0, 128], sizes = [8, 128], strides = [1, 1]} : vector<8x512xf32> to vector<8x128xf32>
    %206 = arith.negf %205 : vector<8x128xf32>
    %207 = math.exp %206 : vector<8x128xf32>
    %cst_68 = arith.constant 1.000000e+00 : f32
    %208 = vector.broadcast %cst_68 : f32 to vector<8x128xf32>
    %209 = arith.addf %208, %207 : vector<8x128xf32>
    %210 = arith.divf %208, %209 : vector<8x128xf32>
    %211 = vector.extract_strided_slice %198 {offsets = [0, 256], sizes = [8, 128], strides = [1, 1]} : vector<8x512xf32> to vector<8x128xf32>
    %212 = math.tanh %211 : vector<8x128xf32>
    %213 = vector.extract_strided_slice %198 {offsets = [0, 384], sizes = [8, 128], strides = [1, 1]} : vector<8x512xf32> to vector<8x128xf32>
    %214 = arith.negf %213 : vector<8x128xf32>
    %215 = math.exp %214 : vector<8x128xf32>
    %cst_69 = arith.constant 1.000000e+00 : f32
    %216 = vector.broadcast %cst_69 : f32 to vector<8x128xf32>
    %217 = arith.addf %216, %215 : vector<8x128xf32>
    %218 = arith.divf %216, %217 : vector<8x128xf32>
    %219 = arith.mulf %210, %185 : vector<8x128xf32>
    %220 = arith.mulf %204, %212 : vector<8x128xf32>
    %221 = arith.addf %219, %220 : vector<8x128xf32>
    %222 = math.tanh %221 : vector<8x128xf32>
    %223 = arith.mulf %218, %222 : vector<8x128xf32>
    %224 = arith.index_cast %c5_i32 : i32 to index
    %c0_70 = arith.constant 0 : index
    %c0_71 = arith.constant 0 : index
    %225 = vector.load %arg5[%224, %c0_70, %c0_71] : memref<10x8x128xf32, #tpu.memory_space<vmem>>, vector<1x8x128xf32>
    %226 = vector.shape_cast %225 : vector<1x8x128xf32> to vector<8x128xf32>
    %227 = vector.shape_cast %223 : vector<8x128xf32> to vector<1x8x128xf32>
    tpu.vector_store %arg5[%224, %c0_70, %c0_71], %227 {strides = array<i32>} : memref<10x8x128xf32, #tpu.memory_space<vmem>>, vector<1x8x128xf32>,
    %c6_i32 = arith.constant 6 : i32
    %c8_i32_72 = arith.constant 8 : i32
    %228 = arith.muli %c6_i32, %c8_i32_72 : i32
    %229 = tpu.assume_multiple %228, 8 : i32
    %230 = arith.index_cast %229 : i32 to index
    %c0_73 = arith.constant 0 : index
    %231 = vector.load %arg6[%230, %c0_73] : memref<80x512xf32, #tpu.memory_space<vmem>>, vector<8x512xf32>
    %c0_74 = arith.constant 0 : index
    %c0_75 = arith.constant 0 : index
    %232 = vector.load %arg3[%c0_74, %c0_75] : memref<128x512xf32, #tpu.memory_space<vmem>>, vector<128x512xf32>
    %cst_76 = arith.constant dense<0.000000e+00> : vector<8x512xf32>
    %233 = tpu.matmul %223, %232, %cst_76 {dimension_numbers = #tpu.dot_dimension_numbers<[1], [0], [0], [1], [0, 0, 1, 1], [], []>} : vector<8x128xf32>, vector<128x512xf32>, vector<8x512xf32> -> vector<8x512xf32>
    %234 = arith.addf %231, %233 : vector<8x512xf32>
    %235 = vector.extract_strided_slice %234 {offsets = [0, 0], sizes = [8, 128], strides = [1, 1]} : vector<8x512xf32> to vector<8x128xf32>
    %236 = arith.negf %235 : vector<8x128xf32>
    %237 = math.exp %236 : vector<8x128xf32>
    %cst_77 = arith.constant 1.000000e+00 : f32
    %238 = vector.broadcast %cst_77 : f32 to vector<8x128xf32>
    %239 = arith.addf %238, %237 : vector<8x128xf32>
    %240 = arith.divf %238, %239 : vector<8x128xf32>
    %241 = vector.extract_strided_slice %234 {offsets = [0, 128], sizes = [8, 128], strides = [1, 1]} : vector<8x512xf32> to vector<8x128xf32>
    %242 = arith.negf %241 : vector<8x128xf32>
    %243 = math.exp %242 : vector<8x128xf32>
    %cst_78 = arith.constant 1.000000e+00 : f32
    %244 = vector.broadcast %cst_78 : f32 to vector<8x128xf32>
    %245 = arith.addf %244, %243 : vector<8x128xf32>
    %246 = arith.divf %244, %245 : vector<8x128xf32>
    %247 = vector.extract_strided_slice %234 {offsets = [0, 256], sizes = [8, 128], strides = [1, 1]} : vector<8x512xf32> to vector<8x128xf32>
    %248 = math.tanh %247 : vector<8x128xf32>
    %249 = vector.extract_strided_slice %234 {offsets = [0, 384], sizes = [8, 128], strides = [1, 1]} : vector<8x512xf32> to vector<8x128xf32>
    %250 = arith.negf %249 : vector<8x128xf32>
    %251 = math.exp %250 : vector<8x128xf32>
    %cst_79 = arith.constant 1.000000e+00 : f32
    %252 = vector.broadcast %cst_79 : f32 to vector<8x128xf32>
    %253 = arith.addf %252, %251 : vector<8x128xf32>
    %254 = arith.divf %252, %253 : vector<8x128xf32>
    %255 = arith.mulf %246, %221 : vector<8x128xf32>
    %256 = arith.mulf %240, %248 : vector<8x128xf32>
    %257 = arith.addf %255, %256 : vector<8x128xf32>
    %258 = math.tanh %257 : vector<8x128xf32>
    %259 = arith.mulf %254, %258 : vector<8x128xf32>
    %260 = arith.index_cast %c6_i32 : i32 to index
    %c0_80 = arith.constant 0 : index
    %c0_81 = arith.constant 0 : index
    %261 = vector.load %arg5[%260, %c0_80, %c0_81] : memref<10x8x128xf32, #tpu.memory_space<vmem>>, vector<1x8x128xf32>
    %262 = vector.shape_cast %261 : vector<1x8x128xf32> to vector<8x128xf32>
    %263 = vector.shape_cast %259 : vector<8x128xf32> to vector<1x8x128xf32>
    tpu.vector_store %arg5[%260, %c0_80, %c0_81], %263 {strides = array<i32>} : memref<10x8x128xf32, #tpu.memory_space<vmem>>, vector<1x8x128xf32>,
    %c7_i32 = arith.constant 7 : i32
    %c8_i32_82 = arith.constant 8 : i32
    %264 = arith.muli %c7_i32, %c8_i32_82 : i32
    %265 = tpu.assume_multiple %264, 8 : i32
    %266 = arith.index_cast %265 : i32 to index
    %c0_83 = arith.constant 0 : index
    %267 = vector.load %arg6[%266, %c0_83] : memref<80x512xf32, #tpu.memory_space<vmem>>, vector<8x512xf32>
    %c0_84 = arith.constant 0 : index
    %c0_85 = arith.constant 0 : index
    %268 = vector.load %arg3[%c0_84, %c0_85] : memref<128x512xf32, #tpu.memory_space<vmem>>, vector<128x512xf32>
    %cst_86 = arith.constant dense<0.000000e+00> : vector<8x512xf32>
    %269 = tpu.matmul %259, %268, %cst_86 {dimension_numbers = #tpu.dot_dimension_numbers<[1], [0], [0], [1], [0, 0, 1, 1], [], []>} : vector<8x128xf32>, vector<128x512xf32>, vector<8x512xf32> -> vector<8x512xf32>
    %270 = arith.addf %267, %269 : vector<8x512xf32>
    %271 = vector.extract_strided_slice %270 {offsets = [0, 0], sizes = [8, 128], strides = [1, 1]} : vector<8x512xf32> to vector<8x128xf32>
    %272 = arith.negf %271 : vector<8x128xf32>
    %273 = math.exp %272 : vector<8x128xf32>
    %cst_87 = arith.constant 1.000000e+00 : f32
    %274 = vector.broadcast %cst_87 : f32 to vector<8x128xf32>
    %275 = arith.addf %274, %273 : vector<8x128xf32>
    %276 = arith.divf %274, %275 : vector<8x128xf32>
    %277 = vector.extract_strided_slice %270 {offsets = [0, 128], sizes = [8, 128], strides = [1, 1]} : vector<8x512xf32> to vector<8x128xf32>
    %278 = arith.negf %277 : vector<8x128xf32>
    %279 = math.exp %278 : vector<8x128xf32>
    %cst_88 = arith.constant 1.000000e+00 : f32
    %280 = vector.broadcast %cst_88 : f32 to vector<8x128xf32>
    %281 = arith.addf %280, %279 : vector<8x128xf32>
    %282 = arith.divf %280, %281 : vector<8x128xf32>
    %283 = vector.extract_strided_slice %270 {offsets = [0, 256], sizes = [8, 128], strides = [1, 1]} : vector<8x512xf32> to vector<8x128xf32>
    %284 = math.tanh %283 : vector<8x128xf32>
    %285 = vector.extract_strided_slice %270 {offsets = [0, 384], sizes = [8, 128], strides = [1, 1]} : vector<8x512xf32> to vector<8x128xf32>
    %286 = arith.negf %285 : vector<8x128xf32>
    %287 = math.exp %286 : vector<8x128xf32>
    %cst_89 = arith.constant 1.000000e+00 : f32
    %288 = vector.broadcast %cst_89 : f32 to vector<8x128xf32>
    %289 = arith.addf %288, %287 : vector<8x128xf32>
    %290 = arith.divf %288, %289 : vector<8x128xf32>
    %291 = arith.mulf %282, %257 : vector<8x128xf32>
    %292 = arith.mulf %276, %284 : vector<8x128xf32>
    %293 = arith.addf %291, %292 : vector<8x128xf32>
    %294 = math.tanh %293 : vector<8x128xf32>
    %295 = arith.mulf %290, %294 : vector<8x128xf32>
    %296 = arith.index_cast %c7_i32 : i32 to index
    %c0_90 = arith.constant 0 : index
    %c0_91 = arith.constant 0 : index
    %297 = vector.load %arg5[%296, %c0_90, %c0_91] : memref<10x8x128xf32, #tpu.memory_space<vmem>>, vector<1x8x128xf32>
    %298 = vector.shape_cast %297 : vector<1x8x128xf32> to vector<8x128xf32>
    %299 = vector.shape_cast %295 : vector<8x128xf32> to vector<1x8x128xf32>
    tpu.vector_store %arg5[%296, %c0_90, %c0_91], %299 {strides = array<i32>} : memref<10x8x128xf32, #tpu.memory_space<vmem>>, vector<1x8x128xf32>,
    %c8_i32_92 = arith.constant 8 : i32
    %c8_i32_93 = arith.constant 8 : i32
    %300 = arith.muli %c8_i32_92, %c8_i32_93 : i32
    %301 = tpu.assume_multiple %300, 8 : i32
    %302 = arith.index_cast %301 : i32 to index
    %c0_94 = arith.constant 0 : index
    %303 = vector.load %arg6[%302, %c0_94] : memref<80x512xf32, #tpu.memory_space<vmem>>, vector<8x512xf32>
    %c0_95 = arith.constant 0 : index
    %c0_96 = arith.constant 0 : index
    %304 = vector.load %arg3[%c0_95, %c0_96] : memref<128x512xf32, #tpu.memory_space<vmem>>, vector<128x512xf32>
    %cst_97 = arith.constant dense<0.000000e+00> : vector<8x512xf32>
    %305 = tpu.matmul %295, %304, %cst_97 {dimension_numbers = #tpu.dot_dimension_numbers<[1], [0], [0], [1], [0, 0, 1, 1], [], []>} : vector<8x128xf32>, vector<128x512xf32>, vector<8x512xf32> -> vector<8x512xf32>
    %306 = arith.addf %303, %305 : vector<8x512xf32>
    %307 = vector.extract_strided_slice %306 {offsets = [0, 0], sizes = [8, 128], strides = [1, 1]} : vector<8x512xf32> to vector<8x128xf32>
    %308 = arith.negf %307 : vector<8x128xf32>
    %309 = math.exp %308 : vector<8x128xf32>
    %cst_98 = arith.constant 1.000000e+00 : f32
    %310 = vector.broadcast %cst_98 : f32 to vector<8x128xf32>
    %311 = arith.addf %310, %309 : vector<8x128xf32>
    %312 = arith.divf %310, %311 : vector<8x128xf32>
    %313 = vector.extract_strided_slice %306 {offsets = [0, 128], sizes = [8, 128], strides = [1, 1]} : vector<8x512xf32> to vector<8x128xf32>
    %314 = arith.negf %313 : vector<8x128xf32>
    %315 = math.exp %314 : vector<8x128xf32>
    %cst_99 = arith.constant 1.000000e+00 : f32
    %316 = vector.broadcast %cst_99 : f32 to vector<8x128xf32>
    %317 = arith.addf %316, %315 : vector<8x128xf32>
    %318 = arith.divf %316, %317 : vector<8x128xf32>
    %319 = vector.extract_strided_slice %306 {offsets = [0, 256], sizes = [8, 128], strides = [1, 1]} : vector<8x512xf32> to vector<8x128xf32>
    %320 = math.tanh %319 : vector<8x128xf32>
    %321 = vector.extract_strided_slice %306 {offsets = [0, 384], sizes = [8, 128], strides = [1, 1]} : vector<8x512xf32> to vector<8x128xf32>
    %322 = arith.negf %321 : vector<8x128xf32>
    %323 = math.exp %322 : vector<8x128xf32>
    %cst_100 = arith.constant 1.000000e+00 : f32
    %324 = vector.broadcast %cst_100 : f32 to vector<8x128xf32>
    %325 = arith.addf %324, %323 : vector<8x128xf32>
    %326 = arith.divf %324, %325 : vector<8x128xf32>
    %327 = arith.mulf %318, %293 : vector<8x128xf32>
    %328 = arith.mulf %312, %320 : vector<8x128xf32>
    %329 = arith.addf %327, %328 : vector<8x128xf32>
    %330 = math.tanh %329 : vector<8x128xf32>
    %331 = arith.mulf %326, %330 : vector<8x128xf32>
    %332 = arith.index_cast %c8_i32_92 : i32 to index
    %c0_101 = arith.constant 0 : index
    %c0_102 = arith.constant 0 : index
    %333 = vector.load %arg5[%332, %c0_101, %c0_102] : memref<10x8x128xf32, #tpu.memory_space<vmem>>, vector<1x8x128xf32>
    %334 = vector.shape_cast %333 : vector<1x8x128xf32> to vector<8x128xf32>
    %335 = vector.shape_cast %331 : vector<8x128xf32> to vector<1x8x128xf32>
    tpu.vector_store %arg5[%332, %c0_101, %c0_102], %335 {strides = array<i32>} : memref<10x8x128xf32, #tpu.memory_space<vmem>>, vector<1x8x128xf32>,
    %c9_i32 = arith.constant 9 : i32
    %c8_i32_103 = arith.constant 8 : i32
    %336 = arith.muli %c9_i32, %c8_i32_103 : i32
    %337 = tpu.assume_multiple %336, 8 : i32
    %338 = arith.index_cast %337 : i32 to index
    %c0_104 = arith.constant 0 : index
    %339 = vector.load %arg6[%338, %c0_104] : memref<80x512xf32, #tpu.memory_space<vmem>>, vector<8x512xf32>
    %c0_105 = arith.constant 0 : index
    %c0_106 = arith.constant 0 : index
    %340 = vector.load %arg3[%c0_105, %c0_106] : memref<128x512xf32, #tpu.memory_space<vmem>>, vector<128x512xf32>
    %cst_107 = arith.constant dense<0.000000e+00> : vector<8x512xf32>
    %341 = tpu.matmul %331, %340, %cst_107 {dimension_numbers = #tpu.dot_dimension_numbers<[1], [0], [0], [1], [0, 0, 1, 1], [], []>} : vector<8x128xf32>, vector<128x512xf32>, vector<8x512xf32> -> vector<8x512xf32>
    %342 = arith.addf %339, %341 : vector<8x512xf32>
    %343 = vector.extract_strided_slice %342 {offsets = [0, 0], sizes = [8, 128], strides = [1, 1]} : vector<8x512xf32> to vector<8x128xf32>
    %344 = arith.negf %343 : vector<8x128xf32>
    %345 = math.exp %344 : vector<8x128xf32>
    %cst_108 = arith.constant 1.000000e+00 : f32
    %346 = vector.broadcast %cst_108 : f32 to vector<8x128xf32>
    %347 = arith.addf %346, %345 : vector<8x128xf32>
    %348 = arith.divf %346, %347 : vector<8x128xf32>
    %349 = vector.extract_strided_slice %342 {offsets = [0, 128], sizes = [8, 128], strides = [1, 1]} : vector<8x512xf32> to vector<8x128xf32>
    %350 = arith.negf %349 : vector<8x128xf32>
    %351 = math.exp %350 : vector<8x128xf32>
    %cst_109 = arith.constant 1.000000e+00 : f32
    %352 = vector.broadcast %cst_109 : f32 to vector<8x128xf32>
    %353 = arith.addf %352, %351 : vector<8x128xf32>
    %354 = arith.divf %352, %353 : vector<8x128xf32>
    %355 = vector.extract_strided_slice %342 {offsets = [0, 256], sizes = [8, 128], strides = [1, 1]} : vector<8x512xf32> to vector<8x128xf32>
    %356 = math.tanh %355 : vector<8x128xf32>
    %357 = vector.extract_strided_slice %342 {offsets = [0, 384], sizes = [8, 128], strides = [1, 1]} : vector<8x512xf32> to vector<8x128xf32>
    %358 = arith.negf %357 : vector<8x128xf32>
    %359 = math.exp %358 : vector<8x128xf32>
    %cst_110 = arith.constant 1.000000e+00 : f32
    %360 = vector.broadcast %cst_110 : f32 to vector<8x128xf32>
    %361 = arith.addf %360, %359 : vector<8x128xf32>
    %362 = arith.divf %360, %361 : vector<8x128xf32>
    %363 = arith.mulf %354, %329 : vector<8x128xf32>
    %364 = arith.mulf %348, %356 : vector<8x128xf32>
    %365 = arith.addf %363, %364 : vector<8x128xf32>
    %366 = math.tanh %365 : vector<8x128xf32>
    %367 = arith.mulf %362, %366 : vector<8x128xf32>
    %368 = arith.index_cast %c9_i32 : i32 to index
    %c0_111 = arith.constant 0 : index
    %c0_112 = arith.constant 0 : index
    %369 = vector.load %arg5[%368, %c0_111, %c0_112] : memref<10x8x128xf32, #tpu.memory_space<vmem>>, vector<1x8x128xf32>
    %370 = vector.shape_cast %369 : vector<1x8x128xf32> to vector<8x128xf32>
    %371 = vector.shape_cast %367 : vector<8x128xf32> to vector<1x8x128xf32>
    tpu.vector_store %arg5[%368, %c0_111, %c0_112], %371 {strides = array<i32>} : memref<10x8x128xf32, #tpu.memory_space<vmem>>, vector<1x8x128xf32>,
    %c10_i32 = arith.constant 10 : i32
    %c0_113 = arith.constant 0 : index
    %c0_114 = arith.constant 0 : index
    %372 = vector.load %arg7[%c0_113, %c0_114] : memref<8x128xf32, #tpu.memory_space<vmem>>, vector<8x128xf32>
    tpu.vector_store %arg7[%c0_113, %c0_114], %367 {strides = array<i32>} : memref<8x128xf32, #tpu.memory_space<vmem>>, vector<8x128xf32>,
    %c0_115 = arith.constant 0 : index
    %c0_116 = arith.constant 0 : index
    %373 = vector.load %arg8[%c0_115, %c0_116] : memref<8x128xf32, #tpu.memory_space<vmem>>, vector<8x128xf32>
    tpu.vector_store %arg8[%c0_115, %c0_116], %365 {strides = array<i32>} : memref<8x128xf32, #tpu.memory_space<vmem>>, vector<8x128xf32>,
    return
  }
  func.func @transform_0(%arg0: i32) -> (i32, i32) {
    %c0_i32 = arith.constant 0 : i32
    %c0_i32_0 = arith.constant 0 : i32
    return %arg0, %c0_i32 : i32, i32
  }
  func.func @transform_1(%arg0: i32) -> (i32, i32) {
    %c0_i32 = arith.constant 0 : i32
    %c0_i32_0 = arith.constant 0 : i32
    %c0_i32_1 = arith.constant 0 : i32
    return %c0_i32, %c0_i32_0 : i32, i32
  }
  func.func @transform_2(%arg0: i32) -> (i32, i32) {
    %c0_i32 = arith.constant 0 : i32
    %c0_i32_0 = arith.constant 0 : i32
    %c0_i32_1 = arith.constant 0 : i32
    return %c0_i32, %c0_i32_0 : i32, i32
  }
  func.func @transform_3(%arg0: i32) -> (i32, i32) {
    %c0_i32 = arith.constant 0 : i32
    %c0_i32_0 = arith.constant 0 : i32
    %c0_i32_1 = arith.constant 0 : i32
    return %c0_i32, %c0_i32_0 : i32, i32
  }
  func.func @transform_4(%arg0: i32) -> (i32, i32, i32) {
    %c0_i32 = arith.constant 0 : i32
    %c0_i32_0 = arith.constant 0 : i32
    %c0_i32_1 = arith.constant 0 : i32
    return %arg0, %c0_i32, %c0_i32_0 : i32, i32, i32
  }
}

</mosaic_0001>

<bundles_post_ra>
// kernel: _encode_pair.1
= control target key start
LH: loop header
LB: loop body
LE: loop exit
PB: predicated region body
PF: predicated region fallthrough
CT: control target
= control target key end

     0   :  { %9 = vsyncpa [#allocation6], 0  ;;  %s3836_s15 = smov [#allocation5]   ;;  %s5170_s0 = inlined_call_operand.vmem [shape: f32[80,32], index: 0, kind: input, shape index: {}]   ;;  %s5171_s1 = inlined_call_operand.hbm [shape: f32[32,512], index: 1, kind: input, shape index: {}]   ;;  %s5172_s2 = inlined_call_operand.vmem [shape: f32[128,512], index: 2, kind: input, shape index: {}]   ;;  %s5173_s3 = inlined_call_operand.vmem [shape: f32[1,512], index: 3, kind: input, shape index: {}]   ;;  %s5174_s4 = inlined_call_operand.vmem [shape: f32[10,8,128], index: 4, kind: output, shape index: {}]  }
   0x1   :  { %s17_s16 = sshll.u32 %s3836_s15, 4  ;;  %s3812_s19 = scalar_lea.hbm %s5171_s1, 2048  ;;  %s18_s16 = int_to_ptr.vmem [resolvable:$true] %s17_s16 }
   0x2   :  { %p3813_p0 = scmp.ne.s32.totalorder %s5171_s1, %s3812_s19  ;;  %p3816_p1 = scmp.lt.u32.totalorder %s3812_s19, %s5171_s1 }
   0x4   :  { %p3818_p2 = pnand %p3816_p1, %p3813_p0 }
   0x6   :  { %3821 = shalt.err (!%p3818_p2)
}
   0x7   :  { %s3822_s24 = scalar_lea.vmem %s18_s16, 2048  ;;  %p3827_p4 = scmp.lt.s32.totalorder %s18_s16, %s18_s16 }
   0x8   :  { %p3823_p3 = scmp.ne.s32.totalorder %s18_s16, %s3822_s24  ;;  %p3828_p5 = scmp.lt.s32.totalorder %s3822_s24, %s3822_s24 }
   0xa   :  { %p3829_p6 = por %p3828_p5, %p3827_p4 }
   0xc   :  { %p3830_p7 = pnand %p3829_p6, %p3823_p3 }
   0xe   :  { %3833 = shalt.err (!%p3830_p7)
}
   0xf   :  { %s3837_s25 = smov 512   ;;  %s3838_s26 = smov 32  }
  0x10   :  { %23 = dma.hbm_to_vmem [thread:$0]  %s5171_s1, 2048, %s18_s16, [#allocation6], %s3837_s25, %s3837_s25, %s3838_s26  }
  0x11   :  { %3834 = dma.done.wait [#allocation6], 2048  }
  0x12   :  { %3835 = vsyncadd [#allocation6], 4294965248  ;;  %v3839_v0 = vmov 0.0   ;;  %v48_v1 = vld [vmem:[#allocation5 + $0x8] sm:$0xff]  ;;  %v50_v3 = vld [vmem:[#allocation5 + $0x18] sm:$0xff]  ;;  %vm85_vm0 = vcmask 261120  }
  0x13   :  { %180 = vmatprep.mubr.f32.mxu0 %v3839_v0  ;;  %305 = vmatprep.mubr.f32.mxu1 %v3839_v0  ;;  %v52_v2 = vld [vmem:[#allocation5 + $0x28] sm:$0xff]  ;;  %v54_v5 = vld [vmem:[#allocation5 + $0x38] sm:$0xff]  ;;  %v47_v6 = vld [vmem:[#allocation5] sm:$0xff] }
  0x14   :  { %v2912_v4 = vpack.c.bf16 %v52_v2, %v48_v1  ;;  %v51_v7 = vld [vmem:[#allocation5 + $0x20] sm:$0xff]  ;;  %v2920_v8 = vpack.c.bf16 %v54_v5, %v50_v3  ;;  %v49_v10 = vld [vmem:[#allocation5 + $0x10] sm:$0xff]  ;;  %v56_v12 = vld [vmem:[#allocation5 + $0x48] sm:$0xff] }
  0x15   :  { %v2914_v9 = vpack.c.bf16 %v51_v7, %v47_v6  ;;  %v53_v11 = vld [vmem:[#allocation5 + $0x30] sm:$0xff]  ;;  %v60_v14 = vld [vmem:[#allocation5 + $0x68] sm:$0xff]  ;;  %v58_v15 = vld [vmem:[#allocation5 + $0x58] sm:$0xff] }
  0x16   :  { %2913 = vmatprep.subr.bf16.mxu0 %v2912_v4  ;;  %v2922_v13 = vpack.c.bf16 %v53_v11, %v49_v10  ;;  %v62_v16 = vld [vmem:[#allocation5 + $0x78] sm:$0xff]  ;;  %2921 = vmatprep.subr.bf16.mxu1 %v2920_v8  ;;  %v2916_v17 = vpack.c.bf16 %v60_v14, %v56_v12  ;;  %v55_v19 = vld [vmem:[#allocation5 + $0x40] sm:$0xff]  ;;  %v57_v21 = vld [vmem:[#allocation5 + $0x50] sm:$0xff] }
  0x17   :  { %2915 = vmatpush1.bf16.msra.mxu0 %v2914_v9  ;;  %v2924_v18 = vpack.c.bf16 %v62_v16, %v58_v15  ;;  %v59_v20 = vld [vmem:[#allocation5 + $0x60] sm:$0xff]  ;;  %v61_v23 = vld [vmem:[#allocation5 + $0x70] sm:$0xff]  ;;  %v416_v24 = vld [vmem:[%s5172_s2 + $0x8] sm:$0xff] }
  0x18   :  { %2923 = vmatpush1.bf16.msra.mxu1 %v2922_v13  ;;  %v2918_v22 = vpack.c.bf16 %v59_v20, %v55_v19  ;;  %2917 = vmatprep.subr.bf16.mxu0 %v2916_v17  ;;  %v2926_v25 = vpack.c.bf16 %v61_v23, %v57_v21  ;;  %v420_v26 = vld [vmem:[%s5172_s2 + $0x28] sm:$0xff]  ;;  %v415_v27 = vld [vmem:[%s5172_s2] sm:$0xff]  ;;  %v418_v36 = vld [vmem:[%s5172_s2 + $0x18] sm:$0xff] }
  0x19   :  { %2925 = vmatprep.subr.bf16.mxu1 %v2924_v18  ;;  %v419_v28 = vld [vmem:[%s5172_s2 + $0x20] sm:$0xff]  ;;  %v3891_v29 = vpack.c.bf16 %v420_v26, %v416_v24  ;;  %v424_v30 = vld [vmem:[%s5172_s2 + $0x48] sm:$0xff]  ;;  %v422_v37 = vld [vmem:[%s5172_s2 + $0x38] sm:$0xff] }
  0x1a   :  { %v428_v31 = vld [vmem:[%s5172_s2 + $0x68] sm:$0xff]  ;;  %v37_v32 = vld [vmem:[%s5170_s0] sm:$0xff]  ;;  %v3902_v33 = vpack.c.bf16 %v419_v28, %v415_v27  ;;  %v417_v38 = vld [vmem:[%s5172_s2 + $0x10] sm:$0xff]  ;;  %v3922_v40 = vpack.c.bf16 %v422_v37, %v418_v36 }
  0x1b   :  { %2919 = vmatpush1.bf16.msra.mxu0 %v2918_v22  ;;  %v423_v34 = vld [vmem:[%s5172_s2 + $0x40] sm:$0xff]  ;;  %v3920_v39 = vpack.c.bf16 %v428_v31, %v424_v30  ;;  %v421_v41 = vld [vmem:[%s5172_s2 + $0x30] sm:$0xff]  ;;  %v38_v42 = vld [vmem:[%s5170_s0 + $0x8] sm:$0xff] }
  0x1c   :  { %v427_v35 = vld [vmem:[%s5172_s2 + $0x60] sm:$0xff]  ;;  %2927 = vmatpush1.bf16.msra.mxu1 %v2926_v25  ;;  %2929 = vmatprep.subr.bf16.mxu0 %v3891_v29  ;;  %v3931_v43 = vpack.c.bf16 %v421_v41, %v417_v38  ;;  %v432_v44 = vld [vmem:[%s5172_s2 + $0x88] sm:$0xff]  ;;  %v426_v47 = vld [vmem:[%s5172_s2 + $0x58] sm:$0xff] }
  0x1d   :  { %v436_v45 = vld [vmem:[%s5172_s2 + $0xa8] sm:$0xff]  ;;  %v3941_v46 = vpack.c.bf16 %v427_v35, %v423_v34  ;;  %v430_v48 = vld [vmem:[%s5172_s2 + $0x78] sm:$0xff]  ;;  %v425_v49 = vld [vmem:[%s5172_s2 + $0x50] sm:$0xff]  ;;  %2961 = vmatprep.subr.bf16.mxu1 %v3922_v40 }
  0x1e   :  { %2853 = vmatmul.mubr.msk.f32.vlgmr.msra.gmra.mrb[0].mxu0 %vm85_vm0, %v37_v32  ;;  %v429_v50 = vld [vmem:[%s5172_s2 + $0x70] sm:$0xff]  ;;  %v3959_v51 = vpack.c.bf16 %v436_v45, %v432_v44  ;;  %v431_v52 = vld [vmem:[%s5172_s2 + $0x80] sm:$0xff]  ;;  %v3967_v54 = vpack.c.bf16 %v430_v48, %v426_v47  ;;  %v440_v55 = vld [vmem:[%s5172_s2 + $0xc8] sm:$0xff] }
  0x1f   :  { %2863 = vmatmul.mubr.msk.f32.vlgmr.msra.gmra.mrb[0].mxu1 %vm85_vm0, %v37_v32  ;;  %2931 = vmatpush1.bf16.msra.mxu0 %v3902_v33  ;;  %v435_v53 = vld [vmem:[%s5172_s2 + $0xa0] sm:$0xff]  ;;  %v3974_v56 = vpack.c.bf16 %v429_v50, %v425_v49  ;;  %v444_v57 = vld [vmem:[%s5172_s2 + $0xe8] sm:$0xff]  ;;  %v434_v58 = vld [vmem:[%s5172_s2 + $0x98] sm:$0xff] }
  0x20   :  { %186 = vmatprep.mubr.f32.mxu0 %v3839_v0  ;;  %311 = vmatprep.mubr.f32.mxu1 %v3839_v0  ;;  %v438_v59 = vld [vmem:[%s5172_s2 + $0xb8] sm:$0xff]  ;;  %v39_v60 = vld [vmem:[%s5170_s0 + $0x10] sm:$0xff]  ;;  %v3998_v63 = vpack.c.bf16 %v435_v53, %v431_v52  ;;  %v4002_v1 = vpack.c.bf16 %v444_v57, %v440_v55  ;;  %v439_v2 = vld [vmem:[%s5172_s2 + $0xc0] sm:$0xff] }
  0x21   :  { %2933 = vmatprep.subr.bf16.mxu0 %v3920_v39  ;;  %2963 = vmatpush1.bf16.msra.mxu1 %v3931_v43  ;;  %v433_v61 = vld [vmem:[%s5172_s2 + $0x90] sm:$0xff]  ;;  %v443_v3 = vld [vmem:[%s5172_s2 + $0xe0] sm:$0xff]  ;;  %v4010_v4 = vpack.c.bf16 %v438_v59, %v434_v58  ;;  %v448_v5 = vld [vmem:[%s5172_s2 + $0x108] sm:$0xff] }
  0x22   :  { %2854 = vmatmul.mubr.msk.f32.gmra.mrb[2].mxu0 %vm85_vm0, %v38_v42  ;;  %v437_v62 = vld [vmem:[%s5172_s2 + $0xb0] sm:$0xff]  ;;  %2965 = vmatprep.subr.bf16.mxu1 %v3967_v54  ;;  %v452_v7 = vld [vmem:[%s5172_s2 + $0x128] sm:$0xff]  ;;  %v442_v8 = vld [vmem:[%s5172_s2 + $0xd8] sm:$0xff]  ;;  %v4041_v13 = vpack.c.bf16 %v443_v3, %v439_v2 }
  0x23   :  { %2864 = vmatmul.mubr.msk.f32.gmra.mrb[2].mxu1 %vm85_vm0, %v38_v42  ;;  %2935 = vmatpush1.bf16.msra.mxu0 %v3941_v46  ;;  %v4017_v6 = vpack.c.bf16 %v437_v62, %v433_v61  ;;  %v446_v9 = vld [vmem:[%s5172_s2 + $0xf8] sm:$0xff]  ;;  %v441_v11 = vld [vmem:[%s5172_s2 + $0xd0] sm:$0xff]  ;;  %v4045_v14 = vpack.c.bf16 %v452_v7, %v448_v5  ;;  %v447_v16 = vld [vmem:[%s5172_s2 + $0x100] sm:$0xff] }
  0x24   :  { %192 = vmatprep.mubr.f32.mxu0 %v3839_v0  ;;  %317 = vmatprep.mubr.f32.mxu1 %v3839_v0  ;;  %v40_v10 = vld [vmem:[%s5170_s0 + $0x18] sm:$0xff]  ;;  %v445_v12 = vld [vmem:[%s5172_s2 + $0xf0] sm:$0xff]  ;;  %v4047_v15 = vpack.c.bf16 %v446_v9, %v442_v8  ;;  %v451_v17 = vld [vmem:[%s5172_s2 + $0x120] sm:$0xff] }
  0x25   :  { %2937 = vmatprep.subr.bf16.mxu0 %v3959_v51  ;;  %2967 = vmatpush1.bf16.msra.mxu1 %v3974_v56  ;;  %v450_v18 = vld [vmem:[%s5172_s2 + $0x118] sm:$0xff]  ;;  %v4060_v19 = vpack.c.bf16 %v445_v12, %v441_v11  ;;  %v456_v21 = vld [vmem:[%s5172_s2 + $0x148] sm:$0xff]  ;;  %v41_v23 = vld [vmem:[%s5170_s0 + $0x20] sm:$0xff]  ;;  %v4084_v26 = vpack.c.bf16 %v451_v17, %v447_v16 }
  0x26   :  { %2855 = vmatmul.mubr.msk.f32.gmra.mrb[4].mxu0 %vm85_vm0, %v39_v60  ;;  %2969 = vmatprep.subr.bf16.mxu1 %v4010_v4  ;;  %v454_v20 = vld [vmem:[%s5172_s2 + $0x138] sm:$0xff]  ;;  %v460_v22 = vld [vmem:[%s5172_s2 + $0x168] sm:$0xff]  ;;  %v449_v24 = vld [vmem:[%s5172_s2 + $0x110] sm:$0xff] }
  0x27   :  { %2865 = vmatmul.mubr.msk.f32.gmra.mrb[4].mxu1 %vm85_vm0, %v39_v60  ;;  %198 = vmatprep.mubr.f32.mxu0 %v3839_v0  ;;  %v453_v25 = vld [vmem:[%s5172_s2 + $0x130] sm:$0xff]  ;;  %v4088_v27 = vpack.c.bf16 %v454_v20, %v450_v18  ;;  %v4090_v28 = vpack.c.bf16 %v460_v22, %v456_v21  ;;  %v455_v30 = vld [vmem:[%s5172_s2 + $0x140] sm:$0xff]  ;;  %v458_v32 = vld [vmem:[%s5172_s2 + $0x158] sm:$0xff]  ;;  %v65_v22 = vlaneseq }
  0x28   :  { %323 = vmatprep.mubr.f32.mxu1 %v3839_v0  ;;  %2939 = vmatpush1.bf16.msra.mxu0 %v3998_v63  ;;  %v459_v31 = vld [vmem:[%s5172_s2 + $0x160] sm:$0xff]  ;;  %v4103_v34 = vpack.c.bf16 %v453_v25, %v449_v24  ;;  %v462_v35 = vld [vmem:[%s5172_s2 + $0x178] sm:$0xff]  ;;  %v464_v36 = vld [vmem:[%s5172_s2 + $0x188] sm:$0xff] }
  0x29   :  { %2941 = vmatprep.subr.bf16.mxu0 %v4002_v1  ;;  %2971 = vmatpush1.bf16.msra.mxu1 %v4017_v6  ;;  %v468_v37 = vld [vmem:[%s5172_s2 + $0x1a8] sm:$0xff]  ;;  %v457_v41 = vld [vmem:[%s5172_s2 + $0x150] sm:$0xff]  ;;  %v4127_v44 = vpack.c.bf16 %v459_v31, %v455_v30  ;;  %v4131_v45 = vpack.c.bf16 %v462_v35, %v458_v32  ;;  %v463_v48 = vld [vmem:[%s5172_s2 + $0x180] sm:$0xff] }
  0x2a   :  { %2856 = vmatmul.mubr.msk.f32.gmra.mrb[6].mxu0 %vm85_vm0, %v40_v10  ;;  %2973 = vmatprep.subr.bf16.mxu1 %v4047_v15  ;;  %v42_v38 = vld [vmem:[%s5170_s0 + $0x28] sm:$0xff]  ;;  %v461_v42 = vld [vmem:[%s5172_s2 + $0x170] sm:$0xff]  ;;  %v4133_v47 = vpack.c.bf16 %v468_v37, %v464_v36  ;;  %v467_v49 = vld [vmem:[%s5172_s2 + $0x1a0] sm:$0xff] }
  0x2b   :  { %2866 = vmatmul.mubr.msk.f32.gmra.mrb[6].mxu1 %vm85_vm0, %v40_v10  ;;  %204 = vmatprep.mubr.f32.mxu0 %v3839_v0  ;;  %v466_v50 = vld [vmem:[%s5172_s2 + $0x198] sm:$0xff]  ;;  %v4146_v52 = vpack.c.bf16 %v461_v42, %v457_v41  ;;  %v472_v55 = vld [vmem:[%s5172_s2 + $0x1c8] sm:$0xff]  ;;  %v43_v58 = vld [vmem:[%s5170_s0 + $0x30] sm:$0xff]  ;;  %v4170_v61 = vpack.c.bf16 %v467_v49, %v463_v48 }
  0x2c   :  { %329 = vmatprep.mubr.f32.mxu1 %v3839_v0  ;;  %2943 = vmatpush1.bf16.msra.mxu0 %v4041_v13  ;;  %v470_v53 = vld [vmem:[%s5172_s2 + $0x1b8] sm:$0xff]  ;;  %v476_v57 = vld [vmem:[%s5172_s2 + $0x1e8] sm:$0xff]  ;;  %v465_v59 = vld [vmem:[%s5172_s2 + $0x190] sm:$0xff] }
  0x2d   :  { %2945 = vmatprep.subr.bf16.mxu0 %v4045_v14  ;;  %2975 = vmatpush1.bf16.msra.mxu1 %v4060_v19  ;;  %v469_v60 = vld [vmem:[%s5172_s2 + $0x1b0] sm:$0xff]  ;;  %v4174_v62 = vpack.c.bf16 %v470_v53, %v466_v50  ;;  %v4176_v2 = vpack.c.bf16 %v476_v57, %v472_v55  ;;  %v471_v3 = vld [vmem:[%s5172_s2 + $0x1c0] sm:$0xff]  ;;  %v474_v8 = vld [vmem:[%s5172_s2 + $0x1d8] sm:$0xff] }
  0x2e   :  { %2857 = vmatmul.mubr.msk.f32.gmra.mrb[8].mxu0 %vm85_vm0, %v41_v23  ;;  %2977 = vmatprep.subr.bf16.mxu1 %v4088_v27  ;;  %v475_v5 = vld [vmem:[%s5172_s2 + $0x1e0] sm:$0xff]  ;;  %v4186_v7 = vpack.c.bf16 %v469_v60, %v465_v59  ;;  %v478_v9 = vld [vmem:[%s5172_s2 + $0x1f8] sm:$0xff]  ;;  %v473_v11 = vld [vmem:[%s5172_s2 + $0x1d0] sm:$0xff] }
  0x2f   :  { %2867 = vmatmul.mubr.msk.f32.gmra.mrb[8].mxu1 %vm85_vm0, %v41_v23  ;;  %210 = vmatprep.mubr.f32.mxu0 %v3839_v0  ;;  %v44_v10 = vld [vmem:[%s5170_s0 + $0x38] sm:$0xff]  ;;  %v477_v12 = vld [vmem:[%s5172_s2 + $0x1f0] sm:$0xff]  ;;  %v4207_v16 = vpack.c.bf16 %v475_v5, %v471_v3  ;;  %v4211_v17 = vpack.c.bf16 %v478_v9, %v474_v8  ;;  %v45_v20 = vld [vmem:[%s5170_s0 + $0x40] sm:$0xff]  ;;  %v66_v23 = vshrl.u32 %v65_v22, 7 }
  0x30   :  { %335 = vmatprep.mubr.f32.mxu1 %v3839_v0  ;;  %2947 = vmatpush1.bf16.msra.mxu0 %v4084_v26  ;;  %v4215_v18 = vpack.c.bf16 %v477_v12, %v473_v11  ;;  %v46_v21 = vld [vmem:[%s5170_s0 + $0x48] sm:$0xff]  ;;  %v63_v25 = vld [vmem:[%s5173_s3] sm:$0xf] }
  0x31   :  { %2949 = vmatprep.subr.bf16.mxu0 %v4090_v28  ;;  %2979 = vmatpush1.bf16.msra.mxu1 %v4103_v34  ;;  %v67_v24 = vsub.s32 0, %v66_v23  ;;  %v71_v30 = vsub.s32 1, %v66_v23  ;;  %v79_v36 = vsub.s32 3, %v66_v23  ;;  %v75_v53 = vsub.s32 2, %v66_v23 }
  0x32   :  { %2858 = vmatmul.mubr.msk.f32.gmra.mrb[10].mxu0 %vm85_vm0, %v42_v38  ;;  %2981 = vmatprep.subr.bf16.mxu1 %v4131_v45 }
  0x33   :  { %2868 = vmatmul.mubr.msk.f32.gmra.mrb[10].mxu1 %vm85_vm0, %v42_v38  ;;  %216 = vmatprep.mubr.f32.mxu0 %v3839_v0  ;;  %v4278_v31 = vrot.slane %v63_v25, %v67_v24  ;;  %v4280_v32 = vrot.slane %v63_v25, %v71_v30  ;;  %v4284_v50 = vrot.slane %v63_v25, %v79_v36 }
  0x34   :  { %341 = vmatprep.mubr.f32.mxu1 %v3839_v0  ;;  %2951 = vmatpush1.bf16.msra.mxu0 %v4127_v44  ;;  %v4287_v57 = vrot.slane %v63_v25, %v75_v53 }
  0x35   :  { %2953 = vmatprep.subr.bf16.mxu0 %v4133_v47  ;;  %2983 = vmatpush1.bf16.msra.mxu1 %v4146_v52 }
  0x36   :  { %2859 = vmatmul.mubr.msk.f32.gmra.mrb[12].mxu0 %vm85_vm0, %v43_v58  ;;  %2985 = vmatprep.subr.bf16.mxu1 %v4174_v62 }
  0x37   :  { %2869 = vmatmul.mubr.msk.f32.gmra.mrb[12].mxu1 %vm85_vm0, %v43_v58  ;;  %222 = vmatprep.mubr.f32.mxu0 %v3839_v0 }
  0x38   :  { %347 = vmatprep.mubr.f32.mxu1 %v3839_v0  ;;  %2955 = vmatpush1.bf16.msra.mxu0 %v4170_v61 }
  0x39   :  { %2957 = vmatprep.subr.bf16.mxu0 %v4176_v2  ;;  %2987 = vmatpush1.bf16.msra.mxu1 %v4186_v7 }
  0x3a   :  { %2860 = vmatmul.mubr.msk.f32.gmra.mrb[14].mxu0 %vm85_vm0, %v44_v10  ;;  %2989 = vmatprep.subr.bf16.mxu1 %v4211_v17 }
  0x3b   :  { %2870 = vmatmul.mubr.msk.f32.gmra.mrb[14].mxu1 %vm85_vm0, %v44_v10  ;;  %228 = vmatprep.mubr.f32.mxu0 %v3839_v0 }
  0x3c   :  { %353 = vmatprep.mubr.f32.mxu1 %v3839_v0  ;;  %2959 = vmatpush1.bf16.msra.mxu0 %v4207_v16 }
  0x3d   :  { %2993 = vmatprep.subr.bf16.mxu0 %v3891_v29  ;;  %2991 = vmatpush1.bf16.msra.mxu1 %v4215_v18 }
  0x3e   :  { %2861 = vmatmul.mubr.msk.f32.gmra.mrb[16].mxu0 %vm85_vm0, %v45_v20  ;;  %3025 = vmatprep.subr.bf16.mxu1 %v3922_v40 }
  0x3f   :  { %2871 = vmatmul.mubr.msk.f32.gmra.mrb[16].mxu1 %vm85_vm0, %v45_v20  ;;  %234 = vmatprep.mubr.f32.mxu0 %v3839_v0 }
  0x40   :  { %359 = vmatprep.mubr.f32.mxu1 %v3839_v0 }
  0x42   :  { %2862 = vmatmul.mubr.msk.f32.gmra.mrb[18].mxu0 %vm85_vm0, %v46_v21 }
  0x43   :  { %2872 = vmatmul.mubr.msk.f32.gmra.mrb[18].mxu1 %vm85_vm0, %v46_v21  ;;  %543 = vmatprep.mubr.f32.mxu0 %v3839_v0 }
  0x44   :  { %614 = vmatprep.mubr.f32.mxu1 %v3839_v0 }
  0x46   :  { %544 = vmatmul.mubr.f32.vlgmr.msra.gmra.mrb[0].mxu0 %v3839_v0 }
  0x47   :  { %615 = vmatmul.mubr.f32.vlgmr.msra.gmra.mrb[0].mxu1 %v3839_v0  ;;  %2995 = vmatpush1.bf16.msra.mxu0 %v3902_v33 }
  0x48   :  { %3027 = vmatpush1.bf16.msra.mxu1 %v3931_v43  ;;  %2997 = vmatprep.subr.bf16.mxu0 %v3920_v39 }
  0x49   :  { %3029 = vmatprep.subr.bf16.mxu1 %v3967_v54  ;;  %785 = vmatprep.mubr.f32.mxu0 %v3839_v0 }
  0x4a   :  { %856 = vmatprep.mubr.f32.mxu1 %v3839_v0 }
  0x4b   :  { %2999 = vmatpush1.bf16.msra.mxu0 %v3941_v46 }
  0x4c   :  { %3031 = vmatpush1.bf16.msra.mxu1 %v3974_v56  ;;  %3001 = vmatprep.subr.bf16.mxu0 %v3959_v51 }
  0x4d   :  { %3033 = vmatprep.subr.bf16.mxu1 %v4010_v4 }
  0x4f   :  { %3003 = vmatpush1.bf16.msra.mxu0 %v3998_v63 }
  0x50   :  { %3035 = vmatpush1.bf16.msra.mxu1 %v4017_v6  ;;  %3005 = vmatprep.subr.bf16.mxu0 %v4002_v1 }
  0x51   :  { %3037 = vmatprep.subr.bf16.mxu1 %v4047_v15 }
  0x53   :  { %3007 = vmatpush1.bf16.msra.mxu0 %v4041_v13 }
  0x54   :  { %3039 = vmatpush1.bf16.msra.mxu1 %v4060_v19  ;;  %3009 = vmatprep.subr.bf16.mxu0 %v4045_v14 }
  0x55   :  { %3041 = vmatprep.subr.bf16.mxu1 %v4088_v27 }
  0x57   :  { %3011 = vmatpush1.bf16.msra.mxu0 %v4084_v26 }
  0x58   :  { %3043 = vmatpush1.bf16.msra.mxu1 %v4103_v34  ;;  %3013 = vmatprep.subr.bf16.mxu0 %v4090_v28 }
  0x59   :  { %3045 = vmatprep.subr.bf16.mxu1 %v4131_v45 }
  0x5b   :  { %3015 = vmatpush1.bf16.msra.mxu0 %v4127_v44 }
  0x5c   :  { %3047 = vmatpush1.bf16.msra.mxu1 %v4146_v52  ;;  %3017 = vmatprep.subr.bf16.mxu0 %v4133_v47 }
  0x5d   :  { %3049 = vmatprep.subr.bf16.mxu1 %v4174_v62 }
  0x5f   :  { %3019 = vmatpush1.bf16.msra.mxu0 %v4170_v61 }
  0x60   :  { %3051 = vmatpush1.bf16.msra.mxu1 %v4186_v7  ;;  %3021 = vmatprep.subr.bf16.mxu0 %v4176_v2 }
  0x61   :  { %3053 = vmatprep.subr.bf16.mxu1 %v4211_v17 }
  0x63   :  { %3023 = vmatpush1.bf16.msra.mxu0 %v4207_v16 }
  0x64   :  { %3055 = vmatpush1.bf16.msra.mxu1 %v4215_v18  ;;  %3057 = vmatprep.subr.bf16.mxu0 %v3891_v29 }
  0x65   :  { %3089 = vmatprep.subr.bf16.mxu1 %v3922_v40 }
 0x119   :  { %v545_v35 = vpop.f32.mrb[0].mxu0 }
 0x11a   :  { %v3568_v37 = vadd.f32 %v545_v35, %v4278_v31  ;;  %v616_v38 = vpop.f32.mrb[0].mxu1  ;;  %v547_v29 = vpop.f32.mrb[1].mxu0 }
 0x11b   :  { %v3569_v41 = vadd.f32 %v547_v29, %v4280_v32  ;;  %v618_v42 = vpop.f32.mrb[1].mxu1  ;;  %v3588_v59 = vadd.f32 %v616_v38, %v4287_v57 }
 0x11c   :  { %v2873_v48 = vmul.f32 -1.442695, %v3568_v37  ;;  %v3589_v55 = vadd.f32 %v618_v42, %v4284_v50 }
 0x11d   :  { %v2874_v49 = vmul.f32 -1.442695, %v3569_v41 }
 0x11e   :  { %3652 = vpow2.f32 %v2873_v48  ;;  %v2875_v58 = vmul.f32 -1.442695, %v3589_v55 }
 0x11f   :  { %3654 = vpow2.f32 %v2874_v49 }
 0x120   :  { %3656 = vpow2.f32 %v2875_v58 }
 0x121   :  { %3658 = vtanh.f32 %v3588_v59 }
 0x128   :  { %v3653_v60 = vpop.eup %3652 }
 0x129   :  { %v3655_v3 = vpop.eup %3654  ;;  %v628_v5 = vadd.f32 1.0, %v3653_v60 }
 0x12a   :  { %v634_v8 = vadd.f32 1.0, %v3655_v3  ;;  %v3657_v9 = vpop.eup %3656 }
 0x12b   :  { %3660 = vrcp.f32 %v628_v5  ;;  %v3659_v10 = vpop.eup %3658  ;;  %v641_v21 = vadd.f32 1.0, %v3657_v9  ;;  %v1163_v9 = vld [vmem:[%s5172_s2 + $0xa0] sm:$0xff] }
 0x12c   :  { %3662 = vrcp.f32 %v634_v8  ;;  %v1159_v8 = vld [vmem:[%s5172_s2 + $0x80] sm:$0xff] }
 0x12d   :  { %3664 = vrcp.f32 %v641_v21  ;;  %v1167_v21 = vld [vmem:[%s5172_s2 + $0xc0] sm:$0xff] }
 0x135   :  { %v3661_v11 = vpop.eup %3660 }
 0x136   :  { %v3663_v12 = vpop.eup %3662  ;;  %v645_v20 = vmul.f32 %v3661_v11, %v3659_v10  ;;  %v4407_v10 = vpack.c.bf16 %v1163_v9, %v1159_v8  ;;  %v1168_v11 = vld [vmem:[%s5172_s2 + $0xc8] sm:$0xff]  ;;  %v1409_v8 = vld [vmem:[%s5172_s2 + $0xb8] sm:$0xff] }
 0x137   :  { %v644_v22 = vmul.f32 0.0, %v3663_v12  ;;  %v3665_v24 = vpop.eup %3664  ;;  %v1172_v12 = vld [vmem:[%s5172_s2 + $0xe8] sm:$0xff] }
 0x139   :  { %v4290_v23 = vadd.f32 %v645_v20, %v644_v22  ;;  %v4417_v20 = vpack.c.bf16 %v1172_v12, %v1168_v11  ;;  %v1171_v22 = vld [vmem:[%s5172_s2 + $0xe0] sm:$0xff]  ;;  %v1404_v11 = vld [vmem:[%s5172_s2 + $0x90] sm:$0xff] }
 0x13a   :  { %v1408_v12 = vld [vmem:[%s5172_s2 + $0xb0] sm:$0xff] }
 0x13b   :  { %3666 = vtanh.f32 %v4290_v23 }
 0x145   :  { %v3667_v25 = vpop.eup %3666 }
 0x146   :  { %v648_v30 = vmul.f32 %v3667_v25, %v3665_v24  ;;  %v1176_v24 = vld [vmem:[%s5172_s2 + $0x108] sm:$0xff] }
 0x147   :  { %v1180_v25 = vld [vmem:[%s5172_s2 + $0x128] sm:$0xff] }
 0x148   :  { %649 = vst [vmem:[%s5174_s4] sm:$0xff] %v648_v30  ;;  %786 = vmatmul.mubr.f32.vlgmr.msra.gmra.mrb[2].mxu0 %v648_v30  ;;  %857 = vmatmul.mubr.f32.vlgmr.msra.gmra.mrb[2].mxu1 %v648_v30  ;;  %v4435_v30 = vpack.c.bf16 %v1180_v25, %v1176_v24  ;;  %v1417_v24 = vld [vmem:[%s5172_s2 + $0xf8] sm:$0xff] }
 0x149   :  { %3059 = vmatpush1.bf16.msra.mxu0 %v3902_v33  ;;  %3091 = vmatpush1.bf16.msra.mxu1 %v3931_v43 }
 0x14a   :  { %3061 = vmatprep.subr.bf16.mxu0 %v3920_v39  ;;  %3093 = vmatprep.subr.bf16.mxu1 %v3967_v54 }
 0x14b   :  { %1028 = vmatprep.mubr.f32.mxu0 %v3839_v0  ;;  %1099 = vmatprep.mubr.f32.mxu1 %v3839_v0 }
 0x14d   :  { %3063 = vmatpush1.bf16.msra.mxu0 %v3941_v46  ;;  %3095 = vmatpush1.bf16.msra.mxu1 %v3974_v56 }
 0x14e   :  { %3065 = vmatprep.subr.bf16.mxu0 %v3959_v51  ;;  %3097 = vmatprep.subr.bf16.mxu1 %v4010_v4 }
 0x151   :  { %3067 = vmatpush1.bf16.msra.mxu0 %v3998_v63  ;;  %3099 = vmatpush1.bf16.msra.mxu1 %v4017_v6 }
 0x152   :  { %3069 = vmatprep.subr.bf16.mxu0 %v4002_v1  ;;  %3101 = vmatprep.subr.bf16.mxu1 %v4047_v15 }
 0x155   :  { %3071 = vmatpush1.bf16.msra.mxu0 %v4041_v13  ;;  %3103 = vmatpush1.bf16.msra.mxu1 %v4060_v19 }
 0x156   :  { %3073 = vmatprep.subr.bf16.mxu0 %v4045_v14  ;;  %3105 = vmatprep.subr.bf16.mxu1 %v4088_v27 }
 0x159   :  { %3075 = vmatpush1.bf16.msra.mxu0 %v4084_v26  ;;  %3107 = vmatpush1.bf16.msra.mxu1 %v4103_v34 }
 0x15a   :  { %3077 = vmatprep.subr.bf16.mxu0 %v4090_v28  ;;  %3109 = vmatprep.subr.bf16.mxu1 %v4131_v45 }
 0x15d   :  { %3079 = vmatpush1.bf16.msra.mxu0 %v4127_v44  ;;  %3111 = vmatpush1.bf16.msra.mxu1 %v4146_v52 }
 0x15e   :  { %3081 = vmatprep.subr.bf16.mxu0 %v4133_v47  ;;  %3113 = vmatprep.subr.bf16.mxu1 %v4174_v62 }
 0x161   :  { %3083 = vmatpush1.bf16.msra.mxu0 %v4170_v61  ;;  %3115 = vmatpush1.bf16.msra.mxu1 %v4186_v7 }
 0x162   :  { %3085 = vmatprep.subr.bf16.mxu0 %v4176_v2  ;;  %3117 = vmatprep.subr.bf16.mxu1 %v4211_v17 }
 0x165   :  { %3087 = vmatpush1.bf16.msra.mxu0 %v4207_v16  ;;  %3119 = vmatpush1.bf16.msra.mxu1 %v4215_v18 }
 0x166   :  { %3153 = vmatprep.subr.bf16.mxu1 %v3922_v40 }
 0x21b   :  { %v787_v33 = vpop.f32.mrb[2].mxu0  ;;  %v858_v39 = vpop.f32.mrb[2].mxu1 }
 0x21c   :  { %v3570_v46 = vadd.f32 %v787_v33, %v4278_v31  ;;  %v789_v51 = vpop.f32.mrb[3].mxu0  ;;  %v860_v63 = vpop.f32.mrb[3].mxu1  ;;  %v3590_v36 = vadd.f32 %v858_v39, %v4287_v57  ;;  %v1175_v33 = vld [vmem:[%s5172_s2 + $0x100] sm:$0xff] }
 0x21d   :  { %v3571_v1 = vadd.f32 %v789_v51, %v4280_v32  ;;  %v3591_v26 = vadd.f32 %v860_v63, %v4284_v50  ;;  %v1179_v39 = vld [vmem:[%s5172_s2 + $0x120] sm:$0xff] }
 0x21e   :  { %v2876_v13 = vmul.f32 -1.442695, %v3570_v46  ;;  %v4443_v46 = vpack.c.bf16 %v1179_v39, %v1175_v33  ;;  %v1412_v33 = vld [vmem:[%s5172_s2 + $0xd0] sm:$0xff] }
 0x21f   :  { %v2877_v14 = vmul.f32 -1.442695, %v3571_v1  ;;  %v2878_v35 = vmul.f32 -1.442695, %v3591_v26  ;;  %v1416_v39 = vld [vmem:[%s5172_s2 + $0xf0] sm:$0xff] }
 0x220   :  { %3668 = vpow2.f32 %v2876_v13 }
 0x221   :  { %3670 = vpow2.f32 %v2877_v14 }
 0x222   :  { %3672 = vpow2.f32 %v2878_v35 }
 0x223   :  { %3674 = vtanh.f32 %v3590_v36 }
 0x22a   :  { %v3669_v37 = vpop.eup %3668 }
 0x22b   :  { %v3671_v38 = vpop.eup %3670  ;;  %v870_v40 = vadd.f32 1.0, %v3669_v37 }
 0x22c   :  { %v876_v29 = vadd.f32 1.0, %v3671_v38  ;;  %v3673_v41 = vpop.eup %3672 }
 0x22d   :  { %3676 = vrcp.f32 %v870_v40  ;;  %v3675_v42 = vpop.eup %3674  ;;  %v883_v55 = vadd.f32 1.0, %v3673_v41 }
 0x22e   :  { %3678 = vrcp.f32 %v876_v29 }
 0x22f   :  { %3680 = vrcp.f32 %v883_v55 }
 0x237   :  { %v3677_v48 = vpop.eup %3676 }
 0x238   :  { %v3679_v49 = vpop.eup %3678  ;;  %v887_v53 = vmul.f32 %v3677_v48, %v3675_v42 }
 0x239   :  { %v886_v58 = vmul.f32 %v3679_v49, %v4290_v23  ;;  %v3681_v60 = vpop.eup %3680  ;;  %v4425_v23 = vpack.c.bf16 %v1171_v22, %v1167_v21  ;;  %v4526_v21 = vpack.c.bf16 %v1408_v12, %v1404_v11  ;;  %v1413_v22 = vld [vmem:[%s5172_s2 + $0xd8] sm:$0xff]  ;;  %v1442_v12 = vld [vmem:[%s5172_s2 + $0x1c0] sm:$0xff] }
 0x23a   :  { %v4536_v25 = vpack.c.bf16 %v1417_v24, %v1413_v22  ;;  %v1449_v11 = vld [vmem:[%s5172_s2 + $0x1f8] sm:$0xff]  ;;  %v1446_v24 = vld [vmem:[%s5172_s2 + $0x1e0] sm:$0xff] }
 0x23b   :  { %v4334_v59 = vadd.f32 %v887_v53, %v886_v58 }
 0x23d   :  { %3682 = vtanh.f32 %v4334_v59 }
 0x247   :  { %v3683_v3 = vpop.eup %3682 }
 0x248   :  { %v890_v5 = vmul.f32 %v3683_v3, %v3681_v60  ;;  %v1393_v3 = vld [vmem:[%s5172_s2 + $0x38] sm:$0xff] }
 0x24a   :  { %2879 = vst [vmem:[%s5174_s4 + $0x8] sm:$0xff] %v890_v5  ;;  %1029 = vmatmul.mubr.f32.vlgmr.msra.gmra.mrb[4].mxu0 %v890_v5  ;;  %1100 = vmatmul.mubr.f32.vlgmr.msra.gmra.mrb[4].mxu1 %v890_v5 }
 0x24b   :  { %3155 = vmatpush1.bf16.msra.mxu1 %v3931_v43  ;;  %1271 = vmatprep.mubr.f32.mxu0 %v3839_v0  ;;  %v1144_v43 = vld [vmem:[%s5172_s2 + $0x8] sm:$0xff] }
 0x24c   :  { %3157 = vmatprep.subr.bf16.mxu1 %v3967_v54  ;;  %1342 = vmatprep.mubr.f32.mxu1 %v3839_v0  ;;  %v1148_v54 = vld [vmem:[%s5172_s2 + $0x28] sm:$0xff] }
 0x24f   :  { %3159 = vmatpush1.bf16.msra.mxu1 %v3974_v56  ;;  %v4363_v56 = vpack.c.bf16 %v1148_v54, %v1144_v43  ;;  %v1388_v43 = vld [vmem:[%s5172_s2 + $0x10] sm:$0xff] }
 0x250   :  { %3161 = vmatprep.subr.bf16.mxu1 %v4010_v4  ;;  %v1143_v4 = vld [vmem:[%s5172_s2] sm:$0xff]  ;;  %v1392_v54 = vld [vmem:[%s5172_s2 + $0x30] sm:$0xff] }
 0x251   :  { %3121 = vmatprep.subr.bf16.mxu0 %v4363_v56 }
 0x253   :  { %3163 = vmatpush1.bf16.msra.mxu1 %v4017_v6  ;;  %v1147_v6 = vld [vmem:[%s5172_s2 + $0x20] sm:$0xff] }
 0x254   :  { %3165 = vmatprep.subr.bf16.mxu1 %v4047_v15  ;;  %v4371_v15 = vpack.c.bf16 %v1147_v6, %v1143_v4  ;;  %v4490_v4 = vpack.c.bf16 %v1392_v54, %v1388_v43  ;;  %v1397_v6 = vld [vmem:[%s5172_s2 + $0x58] sm:$0xff]  ;;  %v1436_v43 = vld [vmem:[%s5172_s2 + $0x190] sm:$0xff] }
 0x256   :  { %3123 = vmatpush1.bf16.msra.mxu0 %v4371_v15 }
 0x257   :  { %3167 = vmatpush1.bf16.msra.mxu1 %v4060_v19  ;;  %v1152_v19 = vld [vmem:[%s5172_s2 + $0x48] sm:$0xff] }
 0x258   :  { %3169 = vmatprep.subr.bf16.mxu1 %v4088_v27  ;;  %v1156_v27 = vld [vmem:[%s5172_s2 + $0x68] sm:$0xff] }
 0x25b   :  { %3171 = vmatpush1.bf16.msra.mxu1 %v4103_v34  ;;  %v4381_v34 = vpack.c.bf16 %v1156_v27, %v1152_v19  ;;  %v1401_v19 = vld [vmem:[%s5172_s2 + $0x78] sm:$0xff] }
 0x25c   :  { %3173 = vmatprep.subr.bf16.mxu1 %v4131_v45  ;;  %v1151_v45 = vld [vmem:[%s5172_s2 + $0x40] sm:$0xff]  ;;  %v4500_v27 = vpack.c.bf16 %v1401_v19, %v1397_v6  ;;  %v1440_v6 = vld [vmem:[%s5172_s2 + $0x1b0] sm:$0xff]  ;;  %v1443_v19 = vld [vmem:[%s5172_s2 + $0x1c8] sm:$0xff] }
 0x25d   :  { %3125 = vmatprep.subr.bf16.mxu0 %v4381_v34 }
 0x25f   :  { %3175 = vmatpush1.bf16.msra.mxu1 %v4146_v52  ;;  %v1155_v52 = vld [vmem:[%s5172_s2 + $0x60] sm:$0xff] }
 0x260   :  { %3177 = vmatprep.subr.bf16.mxu1 %v4174_v62  ;;  %v4389_v62 = vpack.c.bf16 %v1155_v52, %v1151_v45  ;;  %v1396_v45 = vld [vmem:[%s5172_s2 + $0x50] sm:$0xff] }
 0x261   :  { %v1400_v52 = vld [vmem:[%s5172_s2 + $0x70] sm:$0xff] }
 0x262   :  { %3127 = vmatpush1.bf16.msra.mxu0 %v4389_v62 }
 0x263   :  { %3179 = vmatpush1.bf16.msra.mxu1 %v4186_v7  ;;  %v1160_v7 = vld [vmem:[%s5172_s2 + $0x88] sm:$0xff] }
 0x264   :  { %3181 = vmatprep.subr.bf16.mxu1 %v4211_v17  ;;  %v1164_v17 = vld [vmem:[%s5172_s2 + $0xa8] sm:$0xff] }
 0x267   :  { %3183 = vmatpush1.bf16.msra.mxu1 %v4215_v18  ;;  %v4399_v18 = vpack.c.bf16 %v1164_v17, %v1160_v7  ;;  %v4508_v7 = vpack.c.bf16 %v1400_v52, %v1396_v45  ;;  %v1405_v17 = vld [vmem:[%s5172_s2 + $0x98] sm:$0xff]  ;;  %v1447_v45 = vld [vmem:[%s5172_s2 + $0x1e8] sm:$0xff]  ;;  %v4640_v52 = vpack.c.bf16 %v1440_v6, %v1436_v43 }
 0x268   :  { %v4518_v9 = vpack.c.bf16 %v1409_v8, %v1405_v17  ;;  %v4642_v17 = vpack.c.bf16 %v1447_v45, %v1443_v19  ;;  %v1445_v8 = vld [vmem:[%s5172_s2 + $0x1d8] sm:$0xff] }
 0x269   :  { %3129 = vmatprep.subr.bf16.mxu0 %v4399_v18  ;;  %v4653_v22 = vpack.c.bf16 %v1449_v11, %v1445_v8 }
 0x26a   :  { %3131 = vmatpush1.bf16.msra.mxu0 %v4407_v10 }
 0x26b   :  { %3133 = vmatprep.subr.bf16.mxu0 %v4417_v20 }
 0x26e   :  { %3135 = vmatpush1.bf16.msra.mxu0 %v4425_v23 }
 0x26f   :  { %3137 = vmatprep.subr.bf16.mxu0 %v4435_v30 }
 0x272   :  { %3139 = vmatpush1.bf16.msra.mxu0 %v4443_v46 }
 0x273   :  { %3141 = vmatprep.subr.bf16.mxu0 %v4090_v28 }
 0x276   :  { %3143 = vmatpush1.bf16.msra.mxu0 %v4127_v44 }
 0x277   :  { %3145 = vmatprep.subr.bf16.mxu0 %v4133_v47 }
 0x27a   :  { %3147 = vmatpush1.bf16.msra.mxu0 %v4170_v61 }
 0x27b   :  { %3149 = vmatprep.subr.bf16.mxu0 %v4176_v2 }
 0x27e   :  { %3151 = vmatpush1.bf16.msra.mxu0 %v4207_v16 }
 0x27f   :  { %3185 = vmatprep.subr.bf16.mxu0 %v4363_v56 }
 0x31d   :  { %v1030_v51 = vpop.f32.mrb[4].mxu0  ;;  %v1101_v63 = vpop.f32.mrb[4].mxu1 }
 0x31e   :  { %v3572_v1 = vadd.f32 %v1030_v51, %v4278_v31  ;;  %v1032_v13 = vpop.f32.mrb[5].mxu0  ;;  %v1103_v14 = vpop.f32.mrb[5].mxu1  ;;  %v3592_v2 = vadd.f32 %v1101_v63, %v4287_v57  ;;  %v4544_v51 = vpack.c.bf16 %v1416_v39, %v1412_v33  ;;  %v1421_v63 = vld [vmem:[%s5172_s2 + $0x118] sm:$0xff]  ;;  %v1444_v33 = vld [vmem:[%s5172_s2 + $0x1d0] sm:$0xff] }
 0x31f   :  { %v3573_v28 = vadd.f32 %v1032_v13, %v4280_v32  ;;  %v3593_v47 = vadd.f32 %v1103_v14, %v4284_v50  ;;  %v1420_v14 = vld [vmem:[%s5172_s2 + $0x110] sm:$0xff] }
 0x320   :  { %v2880_v26 = vmul.f32 -1.442695, %v3572_v1  ;;  %v1425_v1 = vld [vmem:[%s5172_s2 + $0x138] sm:$0xff]  ;;  %v1448_v39 = vld [vmem:[%s5172_s2 + $0x1f0] sm:$0xff] }
 0x321   :  { %v2881_v44 = vmul.f32 -1.442695, %v3573_v28  ;;  %v2882_v61 = vmul.f32 -1.442695, %v3593_v47  ;;  %v4554_v13 = vpack.c.bf16 %v1425_v1, %v1421_v63  ;;  %v1424_v28 = vld [vmem:[%s5172_s2 + $0x130] sm:$0xff]  ;;  %v1431_v47 = vld [vmem:[%s5172_s2 + $0x168] sm:$0xff]  ;;  %v4665_v63 = vpack.c.bf16 %v1446_v24, %v1442_v12 }
 0x322   :  { %3684 = vpow2.f32 %v2880_v26  ;;  %v4562_v26 = vpack.c.bf16 %v1424_v28, %v1420_v14  ;;  %v4669_v1 = vpack.c.bf16 %v1448_v39, %v1444_v33 }
 0x323   :  { %3686 = vpow2.f32 %v2881_v44  ;;  %v1427_v44 = vld [vmem:[%s5172_s2 + $0x148] sm:$0xff] }
 0x324   :  { %3688 = vpow2.f32 %v2882_v61  ;;  %v1429_v61 = vld [vmem:[%s5172_s2 + $0x158] sm:$0xff] }
 0x325   :  { %3690 = vtanh.f32 %v3592_v2  ;;  %v4575_v2 = vpack.c.bf16 %v1431_v47, %v1427_v44 }
 0x32c   :  { %v3685_v16 = vpop.eup %3684 }
 0x32d   :  { %v3687_v35 = vpop.eup %3686  ;;  %v1113_v36 = vadd.f32 1.0, %v3685_v16  ;;  %v1433_v16 = vld [vmem:[%s5172_s2 + $0x178] sm:$0xff] }
 0x32e   :  { %v1119_v37 = vadd.f32 1.0, %v3687_v35  ;;  %v3689_v38 = vpop.eup %3688  ;;  %v1426_v35 = vld [vmem:[%s5172_s2 + $0x140] sm:$0xff] }
 0x32f   :  { %3692 = vrcp.f32 %v1113_v36  ;;  %v3691_v40 = vpop.eup %3690  ;;  %v1126_v48 = vadd.f32 1.0, %v3689_v38  ;;  %v1430_v36 = vld [vmem:[%s5172_s2 + $0x160] sm:$0xff] }
 0x330   :  { %3694 = vrcp.f32 %v1119_v37  ;;  %v4586_v37 = vpack.c.bf16 %v1433_v16, %v1429_v61  ;;  %v4588_v38 = vpack.c.bf16 %v1430_v36, %v1426_v35 }
 0x331   :  { %3696 = vrcp.f32 %v1126_v48  ;;  %v1439_v48 = vld [vmem:[%s5172_s2 + $0x1a8] sm:$0xff] }
 0x339   :  { %v3693_v29 = vpop.eup %3692 }
 0x33a   :  { %v3695_v41 = vpop.eup %3694  ;;  %v1130_v42 = vmul.f32 %v3693_v29, %v3691_v40  ;;  %v1428_v40 = vld [vmem:[%s5172_s2 + $0x150] sm:$0xff] }
 0x33b   :  { %v1129_v49 = vmul.f32 %v3695_v41, %v4334_v59  ;;  %v3697_v55 = vpop.eup %3696  ;;  %v1389_v59 = vld [vmem:[%s5172_s2 + $0x18] sm:$0xff]  ;;  %v1432_v29 = vld [vmem:[%s5172_s2 + $0x170] sm:$0xff]  ;;  %v1435_v41 = vld [vmem:[%s5172_s2 + $0x188] sm:$0xff] }
 0x33c   :  { %v4482_v5 = vpack.c.bf16 %v1393_v3, %v1389_v59  ;;  %v1434_v59 = vld [vmem:[%s5172_s2 + $0x180] sm:$0xff] }
 0x33d   :  { %v4459_v53 = vadd.f32 %v1130_v42, %v1129_v49  ;;  %v4600_v42 = vpack.c.bf16 %v1432_v29, %v1428_v40  ;;  %v1437_v49 = vld [vmem:[%s5172_s2 + $0x198] sm:$0xff]  ;;  %v1438_v3 = vld [vmem:[%s5172_s2 + $0x1a0] sm:$0xff] }
 0x33e   :  { %3217 = vmatprep.subr.bf16.mxu1 %v4482_v5  ;;  %v4627_v54 = vpack.c.bf16 %v1438_v3, %v1434_v59 }
 0x33f   :  { %3698 = vtanh.f32 %v4459_v53 }
 0x349   :  { %v3699_v58 = vpop.eup %3698 }
 0x34a   :  { %v1133_v60 = vmul.f32 %v3699_v58, %v3697_v55  ;;  %v1441_v55 = vld [vmem:[%s5172_s2 + $0x1b8] sm:$0xff]  ;;  %v4613_v58 = vpack.c.bf16 %v1439_v48, %v1435_v41 }
 0x34c   :  { %2883 = vst [vmem:[%s5174_s4 + $0x10] sm:$0xff] %v1133_v60  ;;  %1272 = vmatmul.mubr.f32.vlgmr.msra.gmra.mrb[6].mxu0 %v1133_v60  ;;  %1343 = vmatmul.mubr.f32.vlgmr.msra.gmra.mrb[6].mxu1 %v1133_v60  ;;  %v4615_v60 = vpack.c.bf16 %v1441_v55, %v1437_v49 }
 0x34d   :  { %3187 = vmatpush1.bf16.msra.mxu0 %v4371_v15  ;;  %1514 = vmatprep.mubr.f32.mxu0 %v3839_v0 }
 0x34e   :  { %3189 = vmatprep.subr.bf16.mxu0 %v4381_v34  ;;  %1585 = vmatprep.mubr.f32.mxu1 %v3839_v0 }
 0x34f   :  { %3219 = vmatpush1.bf16.msra.mxu1 %v4490_v4 }
 0x350   :  { %3221 = vmatprep.subr.bf16.mxu1 %v4500_v27 }
 0x351   :  { %3191 = vmatpush1.bf16.msra.mxu0 %v4389_v62 }
 0x352   :  { %3193 = vmatprep.subr.bf16.mxu0 %v4399_v18 }
 0x353   :  { %3223 = vmatpush1.bf16.msra.mxu1 %v4508_v7 }
 0x354   :  { %3225 = vmatprep.subr.bf16.mxu1 %v4518_v9 }
 0x355   :  { %3195 = vmatpush1.bf16.msra.mxu0 %v4407_v10 }
 0x356   :  { %3197 = vmatprep.subr.bf16.mxu0 %v4417_v20 }
 0x357   :  { %3227 = vmatpush1.bf16.msra.mxu1 %v4526_v21 }
 0x358   :  { %3229 = vmatprep.subr.bf16.mxu1 %v4536_v25 }
 0x359   :  { %3199 = vmatpush1.bf16.msra.mxu0 %v4425_v23 }
 0x35a   :  { %3201 = vmatprep.subr.bf16.mxu0 %v4435_v30 }
 0x35b   :  { %3231 = vmatpush1.bf16.msra.mxu1 %v4544_v51 }
 0x35c   :  { %3233 = vmatprep.subr.bf16.mxu1 %v4554_v13 }
 0x35d   :  { %3203 = vmatpush1.bf16.msra.mxu0 %v4443_v46 }
 0x35e   :  { %3205 = vmatprep.subr.bf16.mxu0 %v4575_v2 }
 0x35f   :  { %3235 = vmatpush1.bf16.msra.mxu1 %v4562_v26 }
 0x360   :  { %3237 = vmatprep.subr.bf16.mxu1 %v4586_v37 }
 0x361   :  { %3207 = vmatpush1.bf16.msra.mxu0 %v4588_v38 }
 0x362   :  { %3209 = vmatprep.subr.bf16.mxu0 %v4613_v58 }
 0x363   :  { %3239 = vmatpush1.bf16.msra.mxu1 %v4600_v42 }
 0x364   :  { %3241 = vmatprep.subr.bf16.mxu1 %v4615_v60 }
 0x365   :  { %3211 = vmatpush1.bf16.msra.mxu0 %v4627_v54 }
 0x366   :  { %3213 = vmatprep.subr.bf16.mxu0 %v4642_v17 }
 0x367   :  { %3243 = vmatpush1.bf16.msra.mxu1 %v4640_v52 }
 0x368   :  { %3245 = vmatprep.subr.bf16.mxu1 %v4653_v22 }
 0x369   :  { %3215 = vmatpush1.bf16.msra.mxu0 %v4665_v63 }
 0x36a   :  { %3249 = vmatprep.subr.bf16.mxu0 %v4363_v56 }
 0x36b   :  { %3247 = vmatpush1.bf16.msra.mxu1 %v4669_v1 }
 0x36c   :  { %3281 = vmatprep.subr.bf16.mxu1 %v4482_v5 }
 0x41f   :  { %v1273_v14 = vpop.f32.mrb[6].mxu0  ;;  %v1344_v28 = vpop.f32.mrb[6].mxu1 }
 0x420   :  { %v3574_v44 = vadd.f32 %v1273_v14, %v4278_v31  ;;  %v1275_v47 = vpop.f32.mrb[7].mxu0  ;;  %v1346_v61 = vpop.f32.mrb[7].mxu1  ;;  %v3594_v41 = vadd.f32 %v1344_v28, %v4287_v57 }
 0x421   :  { %v3575_v16 = vadd.f32 %v1275_v47, %v4280_v32  ;;  %v3595_v40 = vadd.f32 %v1346_v61, %v4284_v50 }
 0x422   :  { %v2884_v35 = vmul.f32 -1.442695, %v3574_v44 }
 0x423   :  { %v2885_v36 = vmul.f32 -1.442695, %v3575_v16  ;;  %v2886_v29 = vmul.f32 -1.442695, %v3595_v40 }
 0x424   :  { %3700 = vpow2.f32 %v2884_v35 }
 0x425   :  { %3702 = vpow2.f32 %v2885_v36 }
 0x426   :  { %3704 = vpow2.f32 %v2886_v29 }
 0x427   :  { %3706 = vtanh.f32 %v3594_v41 }
 0x42e   :  { %v3701_v48 = vpop.eup %3700 }
 0x42f   :  { %v3703_v49 = vpop.eup %3702  ;;  %v1356_v55 = vadd.f32 1.0, %v3701_v48 }
 0x430   :  { %v1362_v59 = vadd.f32 1.0, %v3703_v49  ;;  %v3705_v3 = vpop.eup %3704 }
 0x431   :  { %3708 = vrcp.f32 %v1356_v55  ;;  %v3707_v43 = vpop.eup %3706  ;;  %v1369_v8 = vadd.f32 1.0, %v3705_v3 }
 0x432   :  { %3710 = vrcp.f32 %v1362_v59 }
 0x433   :  { %3712 = vrcp.f32 %v1369_v8 }
 0x43b   :  { %v3709_v6 = vpop.eup %3708 }
 0x43c   :  { %v3711_v19 = vpop.eup %3710  ;;  %v1373_v45 = vmul.f32 %v3709_v6, %v3707_v43 }
 0x43d   :  { %v1372_v11 = vmul.f32 %v3711_v19, %v4459_v53  ;;  %v3713_v24 = vpop.eup %3712 }
 0x43f   :  { %v4681_v12 = vadd.f32 %v1373_v45, %v1372_v11 }
 0x441   :  { %3714 = vtanh.f32 %v4681_v12 }
 0x44b   :  { %v3715_v33 = vpop.eup %3714 }
 0x44c   :  { %v1376_v39 = vmul.f32 %v3715_v33, %v3713_v24 }
 0x44e   :  { %2887 = vst [vmem:[%s5174_s4 + $0x18] sm:$0xff] %v1376_v39  ;;  %1515 = vmatmul.mubr.f32.vlgmr.msra.gmra.mrb[8].mxu0 %v1376_v39  ;;  %1586 = vmatmul.mubr.f32.vlgmr.msra.gmra.mrb[8].mxu1 %v1376_v39 }
 0x44f   :  { %3251 = vmatpush1.bf16.msra.mxu0 %v4371_v15  ;;  %3283 = vmatpush1.bf16.msra.mxu1 %v4490_v4 }
 0x450   :  { %3253 = vmatprep.subr.bf16.mxu0 %v4381_v34  ;;  %3285 = vmatprep.subr.bf16.mxu1 %v4500_v27 }
 0x451   :  { %1757 = vmatprep.mubr.f32.mxu0 %v3839_v0  ;;  %1828 = vmatprep.mubr.f32.mxu1 %v3839_v0 }
 0x453   :  { %3255 = vmatpush1.bf16.msra.mxu0 %v4389_v62  ;;  %3287 = vmatpush1.bf16.msra.mxu1 %v4508_v7 }
 0x454   :  { %3257 = vmatprep.subr.bf16.mxu0 %v4399_v18  ;;  %3289 = vmatprep.subr.bf16.mxu1 %v4518_v9 }
 0x457   :  { %3259 = vmatpush1.bf16.msra.mxu0 %v4407_v10  ;;  %3291 = vmatpush1.bf16.msra.mxu1 %v4526_v21 }
 0x458   :  { %3261 = vmatprep.subr.bf16.mxu0 %v4417_v20  ;;  %3293 = vmatprep.subr.bf16.mxu1 %v4536_v25 }
 0x45b   :  { %3263 = vmatpush1.bf16.msra.mxu0 %v4425_v23  ;;  %3295 = vmatpush1.bf16.msra.mxu1 %v4544_v51 }
 0x45c   :  { %3265 = vmatprep.subr.bf16.mxu0 %v4435_v30  ;;  %3297 = vmatprep.subr.bf16.mxu1 %v4554_v13 }
 0x45f   :  { %3267 = vmatpush1.bf16.msra.mxu0 %v4443_v46  ;;  %3299 = vmatpush1.bf16.msra.mxu1 %v4562_v26 }
 0x460   :  { %3269 = vmatprep.subr.bf16.mxu0 %v4575_v2  ;;  %3301 = vmatprep.subr.bf16.mxu1 %v4586_v37 }
 0x463   :  { %3271 = vmatpush1.bf16.msra.mxu0 %v4588_v38  ;;  %3303 = vmatpush1.bf16.msra.mxu1 %v4600_v42 }
 0x464   :  { %3273 = vmatprep.subr.bf16.mxu0 %v4613_v58  ;;  %3305 = vmatprep.subr.bf16.mxu1 %v4615_v60 }
 0x467   :  { %3275 = vmatpush1.bf16.msra.mxu0 %v4627_v54  ;;  %3307 = vmatpush1.bf16.msra.mxu1 %v4640_v52 }
 0x468   :  { %3277 = vmatprep.subr.bf16.mxu0 %v4642_v17  ;;  %3309 = vmatprep.subr.bf16.mxu1 %v4653_v22 }
 0x46b   :  { %3279 = vmatpush1.bf16.msra.mxu0 %v4665_v63  ;;  %3311 = vmatpush1.bf16.msra.mxu1 %v4669_v1 }
 0x46c   :  { %3313 = vmatprep.subr.bf16.mxu0 %v4363_v56  ;;  %3345 = vmatprep.subr.bf16.mxu1 %v4482_v5 }
 0x521   :  { %v1516_v53 = vpop.f32.mrb[8].mxu0  ;;  %v1587_v14 = vpop.f32.mrb[8].mxu1 }
 0x522   :  { %v3576_v28 = vadd.f32 %v1516_v53, %v4278_v31  ;;  %v1518_v44 = vpop.f32.mrb[9].mxu0  ;;  %v1589_v47 = vpop.f32.mrb[9].mxu1  ;;  %v3596_v29 = vadd.f32 %v1587_v14, %v4287_v57 }
 0x523   :  { %v3577_v61 = vadd.f32 %v1518_v44, %v4280_v32  ;;  %v3597_v36 = vadd.f32 %v1589_v47, %v4284_v50 }
 0x524   :  { %v2888_v16 = vmul.f32 -1.442695, %v3576_v28 }
 0x525   :  { %v2889_v35 = vmul.f32 -1.442695, %v3577_v61  ;;  %v2890_v40 = vmul.f32 -1.442695, %v3597_v36 }
 0x526   :  { %3716 = vpow2.f32 %v2888_v16 }
 0x527   :  { %3718 = vpow2.f32 %v2889_v35 }
 0x528   :  { %3720 = vpow2.f32 %v2890_v40 }
 0x529   :  { %3722 = vtanh.f32 %v3596_v29 }
 0x530   :  { %v3717_v56 = vpop.eup %3716 }
 0x531   :  { %v3719_v41 = vpop.eup %3718  ;;  %v1599_v48 = vadd.f32 1.0, %v3717_v56 }
 0x532   :  { %v1605_v49 = vadd.f32 1.0, %v3719_v41  ;;  %v3721_v55 = vpop.eup %3720 }
 0x533   :  { %3724 = vrcp.f32 %v1599_v48  ;;  %v3723_v59 = vpop.eup %3722  ;;  %v1612_v19 = vadd.f32 1.0, %v3721_v55  ;;  %v2135_v55 = vld [vmem:[%s5172_s2 + $0xa0] sm:$0xff] }
 0x534   :  { %3726 = vrcp.f32 %v1605_v49  ;;  %v2131_v49 = vld [vmem:[%s5172_s2 + $0x80] sm:$0xff] }
 0x535   :  { %3728 = vrcp.f32 %v1612_v19  ;;  %v2139_v19 = vld [vmem:[%s5172_s2 + $0xc0] sm:$0xff] }
 0x53d   :  { %v3725_v3 = vpop.eup %3724 }
 0x53e   :  { %v3727_v43 = vpop.eup %3726  ;;  %v1616_v6 = vmul.f32 %v3725_v3, %v3723_v59  ;;  %v4843_v59 = vpack.c.bf16 %v2135_v55, %v2131_v49  ;;  %v2140_v3 = vld [vmem:[%s5172_s2 + $0xc8] sm:$0xff]  ;;  %v2381_v49 = vld [vmem:[%s5172_s2 + $0xb8] sm:$0xff] }
 0x53f   :  { %v1615_v45 = vmul.f32 %v3727_v43, %v4681_v12  ;;  %v3729_v11 = vpop.eup %3728  ;;  %v2144_v43 = vld [vmem:[%s5172_s2 + $0xe8] sm:$0xff] }
 0x541   :  { %v4726_v8 = vadd.f32 %v1616_v6, %v1615_v45  ;;  %v4853_v6 = vpack.c.bf16 %v2144_v43, %v2140_v3  ;;  %v2143_v45 = vld [vmem:[%s5172_s2 + $0xe0] sm:$0xff]  ;;  %v2376_v3 = vld [vmem:[%s5172_s2 + $0x90] sm:$0xff] }
 0x542   :  { %v2380_v43 = vld [vmem:[%s5172_s2 + $0xb0] sm:$0xff] }
 0x543   :  { %3730 = vtanh.f32 %v4726_v8 }
 0x54d   :  { %v3731_v24 = vpop.eup %3730 }
 0x54e   :  { %v1619_v33 = vmul.f32 %v3731_v24, %v3729_v11  ;;  %v2148_v11 = vld [vmem:[%s5172_s2 + $0x108] sm:$0xff] }
 0x54f   :  { %v2152_v24 = vld [vmem:[%s5172_s2 + $0x128] sm:$0xff] }
 0x550   :  { %2891 = vst [vmem:[%s5174_s4 + $0x20] sm:$0xff] %v1619_v33  ;;  %1758 = vmatmul.mubr.f32.vlgmr.msra.gmra.mrb[10].mxu0 %v1619_v33  ;;  %1829 = vmatmul.mubr.f32.vlgmr.msra.gmra.mrb[10].mxu1 %v1619_v33  ;;  %v4871_v33 = vpack.c.bf16 %v2152_v24, %v2148_v11  ;;  %v2389_v11 = vld [vmem:[%s5172_s2 + $0xf8] sm:$0xff] }
 0x551   :  { %3315 = vmatpush1.bf16.msra.mxu0 %v4371_v15  ;;  %3347 = vmatpush1.bf16.msra.mxu1 %v4490_v4 }
 0x552   :  { %3317 = vmatprep.subr.bf16.mxu0 %v4381_v34  ;;  %3349 = vmatprep.subr.bf16.mxu1 %v4500_v27 }
 0x553   :  { %2000 = vmatprep.mubr.f32.mxu0 %v3839_v0  ;;  %2071 = vmatprep.mubr.f32.mxu1 %v3839_v0 }
 0x555   :  { %3319 = vmatpush1.bf16.msra.mxu0 %v4389_v62  ;;  %3351 = vmatpush1.bf16.msra.mxu1 %v4508_v7 }
 0x556   :  { %3321 = vmatprep.subr.bf16.mxu0 %v4399_v18  ;;  %3353 = vmatprep.subr.bf16.mxu1 %v4518_v9 }
 0x559   :  { %3323 = vmatpush1.bf16.msra.mxu0 %v4407_v10  ;;  %3355 = vmatpush1.bf16.msra.mxu1 %v4526_v21 }
 0x55a   :  { %3325 = vmatprep.subr.bf16.mxu0 %v4417_v20  ;;  %3357 = vmatprep.subr.bf16.mxu1 %v4536_v25 }
 0x55d   :  { %3327 = vmatpush1.bf16.msra.mxu0 %v4425_v23  ;;  %3359 = vmatpush1.bf16.msra.mxu1 %v4544_v51 }
 0x55e   :  { %3329 = vmatprep.subr.bf16.mxu0 %v4435_v30  ;;  %3361 = vmatprep.subr.bf16.mxu1 %v4554_v13 }
 0x561   :  { %3331 = vmatpush1.bf16.msra.mxu0 %v4443_v46  ;;  %3363 = vmatpush1.bf16.msra.mxu1 %v4562_v26 }
 0x562   :  { %3333 = vmatprep.subr.bf16.mxu0 %v4575_v2  ;;  %3365 = vmatprep.subr.bf16.mxu1 %v4586_v37 }
 0x565   :  { %3335 = vmatpush1.bf16.msra.mxu0 %v4588_v38  ;;  %3367 = vmatpush1.bf16.msra.mxu1 %v4600_v42 }
 0x566   :  { %3337 = vmatprep.subr.bf16.mxu0 %v4613_v58  ;;  %3369 = vmatprep.subr.bf16.mxu1 %v4615_v60 }
 0x569   :  { %3339 = vmatpush1.bf16.msra.mxu0 %v4627_v54  ;;  %3371 = vmatpush1.bf16.msra.mxu1 %v4640_v52 }
 0x56a   :  { %3341 = vmatprep.subr.bf16.mxu0 %v4642_v17  ;;  %3373 = vmatprep.subr.bf16.mxu1 %v4653_v22 }
 0x56d   :  { %3343 = vmatpush1.bf16.msra.mxu0 %v4665_v63  ;;  %3375 = vmatpush1.bf16.msra.mxu1 %v4669_v1 }
 0x56e   :  { %3409 = vmatprep.subr.bf16.mxu1 %v4482_v5 }
 0x623   :  { %v1759_v15 = vpop.f32.mrb[10].mxu0  ;;  %v1830_v34 = vpop.f32.mrb[10].mxu1 }
 0x624   :  { %v3578_v62 = vadd.f32 %v1759_v15, %v4278_v31  ;;  %v1761_v18 = vpop.f32.mrb[11].mxu0  ;;  %v1832_v10 = vpop.f32.mrb[11].mxu1  ;;  %v3598_v39 = vadd.f32 %v1830_v34, %v4287_v57  ;;  %v2147_v15 = vld [vmem:[%s5172_s2 + $0x100] sm:$0xff] }
 0x625   :  { %v3579_v20 = vadd.f32 %v1761_v18, %v4280_v32  ;;  %v3599_v46 = vadd.f32 %v1832_v10, %v4284_v50  ;;  %v2151_v34 = vld [vmem:[%s5172_s2 + $0x120] sm:$0xff] }
 0x626   :  { %v2892_v23 = vmul.f32 -1.442695, %v3578_v62  ;;  %v4879_v62 = vpack.c.bf16 %v2151_v34, %v2147_v15  ;;  %v2384_v15 = vld [vmem:[%s5172_s2 + $0xd0] sm:$0xff] }
 0x627   :  { %v2893_v30 = vmul.f32 -1.442695, %v3579_v20  ;;  %v2894_v12 = vmul.f32 -1.442695, %v3599_v46  ;;  %v2388_v34 = vld [vmem:[%s5172_s2 + $0xf0] sm:$0xff] }
 0x628   :  { %3732 = vpow2.f32 %v2892_v23 }
 0x629   :  { %3734 = vpow2.f32 %v2893_v30 }
 0x62a   :  { %3736 = vpow2.f32 %v2894_v12 }
 0x62b   :  { %3738 = vtanh.f32 %v3598_v39 }
 0x632   :  { %v3733_v53 = vpop.eup %3732 }
 0x633   :  { %v3735_v14 = vpop.eup %3734  ;;  %v1842_v5 = vadd.f32 1.0, %v3733_v53 }
 0x634   :  { %v1848_v28 = vadd.f32 1.0, %v3735_v14  ;;  %v3737_v44 = vpop.eup %3736 }
 0x635   :  { %3740 = vrcp.f32 %v1842_v5  ;;  %v3739_v47 = vpop.eup %3738  ;;  %v1855_v36 = vadd.f32 1.0, %v3737_v44 }
 0x636   :  { %3742 = vrcp.f32 %v1848_v28 }
 0x637   :  { %3744 = vrcp.f32 %v1855_v36 }
 0x63f   :  { %v3741_v61 = vpop.eup %3740 }
 0x640   :  { %v3743_v16 = vpop.eup %3742  ;;  %v1859_v35 = vmul.f32 %v3741_v61, %v3739_v47 }
 0x641   :  { %v1858_v40 = vmul.f32 %v3743_v16, %v4726_v8  ;;  %v3745_v56 = vpop.eup %3744  ;;  %v4861_v8 = vpack.c.bf16 %v2143_v45, %v2139_v19  ;;  %v4962_v19 = vpack.c.bf16 %v2380_v43, %v2376_v3  ;;  %v2385_v45 = vld [vmem:[%s5172_s2 + $0xd8] sm:$0xff]  ;;  %v2414_v43 = vld [vmem:[%s5172_s2 + $0x1c0] sm:$0xff] }
 0x642   :  { %v4972_v24 = vpack.c.bf16 %v2389_v11, %v2385_v45  ;;  %v2421_v3 = vld [vmem:[%s5172_s2 + $0x1f8] sm:$0xff]  ;;  %v2418_v11 = vld [vmem:[%s5172_s2 + $0x1e0] sm:$0xff] }
 0x643   :  { %v4770_v29 = vadd.f32 %v1859_v35, %v1858_v40 }
 0x645   :  { %3746 = vtanh.f32 %v4770_v29 }
 0x64f   :  { %v3747_v41 = vpop.eup %3746 }
 0x650   :  { %v1862_v48 = vmul.f32 %v3747_v41, %v3745_v56  ;;  %v2365_v41 = vld [vmem:[%s5172_s2 + $0x38] sm:$0xff] }
 0x652   :  { %2895 = vst [vmem:[%s5174_s4 + $0x28] sm:$0xff] %v1862_v48  ;;  %2001 = vmatmul.mubr.f32.vlgmr.msra.gmra.mrb[12].mxu0 %v1862_v48  ;;  %2072 = vmatmul.mubr.f32.vlgmr.msra.gmra.mrb[12].mxu1 %v1862_v48 }
 0x653   :  { %3411 = vmatpush1.bf16.msra.mxu1 %v4490_v4  ;;  %2243 = vmatprep.mubr.f32.mxu0 %v3839_v0  ;;  %v2116_v4 = vld [vmem:[%s5172_s2 + $0x8] sm:$0xff] }
 0x654   :  { %3413 = vmatprep.subr.bf16.mxu1 %v4500_v27  ;;  %2314 = vmatprep.mubr.f32.mxu1 %v3839_v0  ;;  %v2120_v27 = vld [vmem:[%s5172_s2 + $0x28] sm:$0xff] }
 0x657   :  { %3415 = vmatpush1.bf16.msra.mxu1 %v4508_v7  ;;  %v4799_v7 = vpack.c.bf16 %v2120_v27, %v2116_v4  ;;  %v2360_v4 = vld [vmem:[%s5172_s2 + $0x10] sm:$0xff] }
 0x658   :  { %3417 = vmatprep.subr.bf16.mxu1 %v4518_v9  ;;  %v2115_v9 = vld [vmem:[%s5172_s2] sm:$0xff]  ;;  %v2364_v27 = vld [vmem:[%s5172_s2 + $0x30] sm:$0xff] }
 0x659   :  { %3377 = vmatprep.subr.bf16.mxu0 %v4799_v7 }
 0x65b   :  { %3419 = vmatpush1.bf16.msra.mxu1 %v4526_v21  ;;  %v2119_v21 = vld [vmem:[%s5172_s2 + $0x20] sm:$0xff] }
 0x65c   :  { %3421 = vmatprep.subr.bf16.mxu1 %v4536_v25  ;;  %v4807_v25 = vpack.c.bf16 %v2119_v21, %v2115_v9  ;;  %v4926_v9 = vpack.c.bf16 %v2364_v27, %v2360_v4  ;;  %v2369_v21 = vld [vmem:[%s5172_s2 + $0x58] sm:$0xff]  ;;  %v2408_v4 = vld [vmem:[%s5172_s2 + $0x190] sm:$0xff] }
 0x65e   :  { %3379 = vmatpush1.bf16.msra.mxu0 %v4807_v25 }
 0x65f   :  { %3423 = vmatpush1.bf16.msra.mxu1 %v4544_v51  ;;  %v2124_v51 = vld [vmem:[%s5172_s2 + $0x48] sm:$0xff] }
 0x660   :  { %3425 = vmatprep.subr.bf16.mxu1 %v4554_v13  ;;  %v2128_v13 = vld [vmem:[%s5172_s2 + $0x68] sm:$0xff] }
 0x663   :  { %3427 = vmatpush1.bf16.msra.mxu1 %v4562_v26  ;;  %v4817_v26 = vpack.c.bf16 %v2128_v13, %v2124_v51  ;;  %v2373_v51 = vld [vmem:[%s5172_s2 + $0x78] sm:$0xff] }
 0x664   :  { %3429 = vmatprep.subr.bf16.mxu1 %v4586_v37  ;;  %v2123_v37 = vld [vmem:[%s5172_s2 + $0x40] sm:$0xff]  ;;  %v4936_v13 = vpack.c.bf16 %v2373_v51, %v2369_v21  ;;  %v2412_v21 = vld [vmem:[%s5172_s2 + $0x1b0] sm:$0xff]  ;;  %v2415_v51 = vld [vmem:[%s5172_s2 + $0x1c8] sm:$0xff] }
 0x665   :  { %3381 = vmatprep.subr.bf16.mxu0 %v4817_v26 }
 0x667   :  { %3431 = vmatpush1.bf16.msra.mxu1 %v4600_v42  ;;  %v2127_v42 = vld [vmem:[%s5172_s2 + $0x60] sm:$0xff] }
 0x668   :  { %3433 = vmatprep.subr.bf16.mxu1 %v4615_v60  ;;  %v4825_v60 = vpack.c.bf16 %v2127_v42, %v2123_v37  ;;  %v2368_v37 = vld [vmem:[%s5172_s2 + $0x50] sm:$0xff] }
 0x669   :  { %v2372_v42 = vld [vmem:[%s5172_s2 + $0x70] sm:$0xff] }
 0x66a   :  { %3383 = vmatpush1.bf16.msra.mxu0 %v4825_v60 }
 0x66b   :  { %3435 = vmatpush1.bf16.msra.mxu1 %v4640_v52  ;;  %v2132_v52 = vld [vmem:[%s5172_s2 + $0x88] sm:$0xff] }
 0x66c   :  { %3437 = vmatprep.subr.bf16.mxu1 %v4653_v22  ;;  %v2136_v22 = vld [vmem:[%s5172_s2 + $0xa8] sm:$0xff] }
 0x66f   :  { %3439 = vmatpush1.bf16.msra.mxu1 %v4669_v1  ;;  %v4835_v1 = vpack.c.bf16 %v2136_v22, %v2132_v52  ;;  %v4944_v52 = vpack.c.bf16 %v2372_v42, %v2368_v37  ;;  %v2377_v22 = vld [vmem:[%s5172_s2 + $0x98] sm:$0xff]  ;;  %v2419_v37 = vld [vmem:[%s5172_s2 + $0x1e8] sm:$0xff]  ;;  %v5076_v42 = vpack.c.bf16 %v2412_v21, %v2408_v4 }
 0x670   :  { %v4954_v55 = vpack.c.bf16 %v2381_v49, %v2377_v22  ;;  %v5078_v22 = vpack.c.bf16 %v2419_v37, %v2415_v51  ;;  %v2417_v49 = vld [vmem:[%s5172_s2 + $0x1d8] sm:$0xff] }
 0x671   :  { %3385 = vmatprep.subr.bf16.mxu0 %v4835_v1  ;;  %v5089_v45 = vpack.c.bf16 %v2421_v3, %v2417_v49 }
 0x672   :  { %3387 = vmatpush1.bf16.msra.mxu0 %v4843_v59 }
 0x673   :  { %3389 = vmatprep.subr.bf16.mxu0 %v4853_v6 }
 0x676   :  { %3391 = vmatpush1.bf16.msra.mxu0 %v4861_v8 }
 0x677   :  { %3393 = vmatprep.subr.bf16.mxu0 %v4871_v33 }
 0x67a   :  { %3395 = vmatpush1.bf16.msra.mxu0 %v4879_v62 }
 0x67b   :  { %3397 = vmatprep.subr.bf16.mxu0 %v4575_v2 }
 0x67e   :  { %3399 = vmatpush1.bf16.msra.mxu0 %v4588_v38 }
 0x67f   :  { %3401 = vmatprep.subr.bf16.mxu0 %v4613_v58 }
 0x682   :  { %3403 = vmatpush1.bf16.msra.mxu0 %v4627_v54 }
 0x683   :  { %3405 = vmatprep.subr.bf16.mxu0 %v4642_v17 }
 0x686   :  { %3407 = vmatpush1.bf16.msra.mxu0 %v4665_v63 }
 0x687   :  { %3441 = vmatprep.subr.bf16.mxu0 %v4799_v7 }
 0x725   :  { %v2002_v18 = vpop.f32.mrb[12].mxu0  ;;  %v2073_v10 = vpop.f32.mrb[12].mxu1 }
 0x726   :  { %v3580_v20 = vadd.f32 %v2002_v18, %v4278_v31  ;;  %v2004_v23 = vpop.f32.mrb[13].mxu0  ;;  %v2075_v30 = vpop.f32.mrb[13].mxu1  ;;  %v3600_v17 = vadd.f32 %v2073_v10, %v4287_v57  ;;  %v4980_v18 = vpack.c.bf16 %v2388_v34, %v2384_v15  ;;  %v2393_v10 = vld [vmem:[%s5172_s2 + $0x118] sm:$0xff]  ;;  %v2416_v15 = vld [vmem:[%s5172_s2 + $0x1d0] sm:$0xff] }
 0x727   :  { %v3581_v2 = vadd.f32 %v2004_v23, %v4280_v32  ;;  %v3601_v58 = vadd.f32 %v2075_v30, %v4284_v50  ;;  %v2392_v30 = vld [vmem:[%s5172_s2 + $0x110] sm:$0xff] }
 0x728   :  { %v2896_v46 = vmul.f32 -1.442695, %v3580_v20  ;;  %v2397_v20 = vld [vmem:[%s5172_s2 + $0x138] sm:$0xff]  ;;  %v2420_v34 = vld [vmem:[%s5172_s2 + $0x1f0] sm:$0xff] }
 0x729   :  { %v2897_v38 = vmul.f32 -1.442695, %v3581_v2  ;;  %v2898_v54 = vmul.f32 -1.442695, %v3601_v58  ;;  %v4990_v23 = vpack.c.bf16 %v2397_v20, %v2393_v10  ;;  %v2396_v2 = vld [vmem:[%s5172_s2 + $0x130] sm:$0xff]  ;;  %v2403_v58 = vld [vmem:[%s5172_s2 + $0x168] sm:$0xff]  ;;  %v5101_v10 = vpack.c.bf16 %v2418_v11, %v2414_v43 }
 0x72a   :  { %3748 = vpow2.f32 %v2896_v46  ;;  %v4998_v46 = vpack.c.bf16 %v2396_v2, %v2392_v30  ;;  %v5105_v20 = vpack.c.bf16 %v2420_v34, %v2416_v15 }
 0x72b   :  { %3750 = vpow2.f32 %v2897_v38  ;;  %v2399_v38 = vld [vmem:[%s5172_s2 + $0x148] sm:$0xff] }
 0x72c   :  { %3752 = vpow2.f32 %v2898_v54  ;;  %v2401_v54 = vld [vmem:[%s5172_s2 + $0x158] sm:$0xff] }
 0x72d   :  { %3754 = vtanh.f32 %v3600_v17  ;;  %v5011_v17 = vpack.c.bf16 %v2403_v58, %v2399_v38 }
 0x734   :  { %v3749_v63 = vpop.eup %3748 }
 0x735   :  { %v3751_v12 = vpop.eup %3750  ;;  %v2085_v39 = vadd.f32 1.0, %v3749_v63  ;;  %v2405_v63 = vld [vmem:[%s5172_s2 + $0x178] sm:$0xff] }
 0x736   :  { %v2091_v53 = vadd.f32 1.0, %v3751_v12  ;;  %v3753_v14 = vpop.eup %3752  ;;  %v2398_v12 = vld [vmem:[%s5172_s2 + $0x140] sm:$0xff] }
 0x737   :  { %3756 = vrcp.f32 %v2085_v39  ;;  %v3755_v5 = vpop.eup %3754  ;;  %v2098_v61 = vadd.f32 1.0, %v3753_v14  ;;  %v2402_v39 = vld [vmem:[%s5172_s2 + $0x160] sm:$0xff] }
 0x738   :  { %3758 = vrcp.f32 %v2091_v53  ;;  %v5022_v53 = vpack.c.bf16 %v2405_v63, %v2401_v54  ;;  %v5024_v14 = vpack.c.bf16 %v2402_v39, %v2398_v12 }
 0x739   :  { %3760 = vrcp.f32 %v2098_v61  ;;  %v2411_v61 = vld [vmem:[%s5172_s2 + $0x1a8] sm:$0xff] }
 0x741   :  { %v3757_v28 = vpop.eup %3756 }
 0x742   :  { %v3759_v44 = vpop.eup %3758  ;;  %v2102_v47 = vmul.f32 %v3757_v28, %v3755_v5  ;;  %v2400_v5 = vld [vmem:[%s5172_s2 + $0x150] sm:$0xff] }
 0x743   :  { %v2101_v16 = vmul.f32 %v3759_v44, %v4770_v29  ;;  %v3761_v36 = vpop.eup %3760  ;;  %v2361_v29 = vld [vmem:[%s5172_s2 + $0x18] sm:$0xff]  ;;  %v2404_v28 = vld [vmem:[%s5172_s2 + $0x170] sm:$0xff]  ;;  %v2407_v44 = vld [vmem:[%s5172_s2 + $0x188] sm:$0xff] }
 0x744   :  { %v4918_v48 = vpack.c.bf16 %v2365_v41, %v2361_v29  ;;  %v2406_v29 = vld [vmem:[%s5172_s2 + $0x180] sm:$0xff] }
 0x745   :  { %v4895_v35 = vadd.f32 %v2102_v47, %v2101_v16  ;;  %v5036_v47 = vpack.c.bf16 %v2404_v28, %v2400_v5  ;;  %v2409_v16 = vld [vmem:[%s5172_s2 + $0x198] sm:$0xff]  ;;  %v2410_v41 = vld [vmem:[%s5172_s2 + $0x1a0] sm:$0xff] }
 0x746   :  { %3473 = vmatprep.subr.bf16.mxu1 %v4918_v48  ;;  %v5063_v27 = vpack.c.bf16 %v2410_v41, %v2406_v29 }
 0x747   :  { %3762 = vtanh.f32 %v4895_v35 }
 0x751   :  { %v3763_v40 = vpop.eup %3762 }
 0x752   :  { %v2105_v56 = vmul.f32 %v3763_v40, %v3761_v36  ;;  %v2413_v36 = vld [vmem:[%s5172_s2 + $0x1b8] sm:$0xff]  ;;  %v5049_v40 = vpack.c.bf16 %v2411_v61, %v2407_v44 }
 0x754   :  { %2899 = vst [vmem:[%s5174_s4 + $0x30] sm:$0xff] %v2105_v56  ;;  %2244 = vmatmul.mubr.f32.vlgmr.msra.gmra.mrb[14].mxu0 %v2105_v56  ;;  %2315 = vmatmul.mubr.f32.vlgmr.msra.gmra.mrb[14].mxu1 %v2105_v56  ;;  %v5051_v56 = vpack.c.bf16 %v2413_v36, %v2409_v16 }
 0x755   :  { %3443 = vmatpush1.bf16.msra.mxu0 %v4807_v25  ;;  %2486 = vmatprep.mubr.f32.mxu0 %v3839_v0 }
 0x756   :  { %3445 = vmatprep.subr.bf16.mxu0 %v4817_v26  ;;  %2557 = vmatprep.mubr.f32.mxu1 %v3839_v0 }
 0x757   :  { %3475 = vmatpush1.bf16.msra.mxu1 %v4926_v9 }
 0x758   :  { %3477 = vmatprep.subr.bf16.mxu1 %v4936_v13 }
 0x759   :  { %3447 = vmatpush1.bf16.msra.mxu0 %v4825_v60 }
 0x75a   :  { %3449 = vmatprep.subr.bf16.mxu0 %v4835_v1 }
 0x75b   :  { %3479 = vmatpush1.bf16.msra.mxu1 %v4944_v52 }
 0x75c   :  { %3481 = vmatprep.subr.bf16.mxu1 %v4954_v55 }
 0x75d   :  { %3451 = vmatpush1.bf16.msra.mxu0 %v4843_v59 }
 0x75e   :  { %3453 = vmatprep.subr.bf16.mxu0 %v4853_v6 }
 0x75f   :  { %3483 = vmatpush1.bf16.msra.mxu1 %v4962_v19 }
 0x760   :  { %3485 = vmatprep.subr.bf16.mxu1 %v4972_v24 }
 0x761   :  { %3455 = vmatpush1.bf16.msra.mxu0 %v4861_v8 }
 0x762   :  { %3457 = vmatprep.subr.bf16.mxu0 %v4871_v33 }
 0x763   :  { %3487 = vmatpush1.bf16.msra.mxu1 %v4980_v18 }
 0x764   :  { %3489 = vmatprep.subr.bf16.mxu1 %v4990_v23 }
 0x765   :  { %3459 = vmatpush1.bf16.msra.mxu0 %v4879_v62 }
 0x766   :  { %3461 = vmatprep.subr.bf16.mxu0 %v5011_v17 }
 0x767   :  { %3491 = vmatpush1.bf16.msra.mxu1 %v4998_v46 }
 0x768   :  { %3493 = vmatprep.subr.bf16.mxu1 %v5022_v53 }
 0x769   :  { %3463 = vmatpush1.bf16.msra.mxu0 %v5024_v14 }
 0x76a   :  { %3465 = vmatprep.subr.bf16.mxu0 %v5049_v40 }
 0x76b   :  { %3495 = vmatpush1.bf16.msra.mxu1 %v5036_v47 }
 0x76c   :  { %3497 = vmatprep.subr.bf16.mxu1 %v5051_v56 }
 0x76d   :  { %3467 = vmatpush1.bf16.msra.mxu0 %v5063_v27 }
 0x76e   :  { %3469 = vmatprep.subr.bf16.mxu0 %v5078_v22 }
 0x76f   :  { %3499 = vmatpush1.bf16.msra.mxu1 %v5076_v42 }
 0x770   :  { %3501 = vmatprep.subr.bf16.mxu1 %v5089_v45 }
 0x771   :  { %3471 = vmatpush1.bf16.msra.mxu0 %v5101_v10 }
 0x772   :  { %3505 = vmatprep.subr.bf16.mxu0 %v4799_v7 }
 0x773   :  { %3503 = vmatpush1.bf16.msra.mxu1 %v5105_v20 }
 0x774   :  { %3537 = vmatprep.subr.bf16.mxu1 %v4918_v48 }
 0x827   :  { %v2245_v30 = vpop.f32.mrb[14].mxu0  ;;  %v2316_v2 = vpop.f32.mrb[14].mxu1 }
 0x828   :  { %v3582_v38 = vadd.f32 %v2245_v30, %v4278_v31  ;;  %v2247_v58 = vpop.f32.mrb[15].mxu0  ;;  %v2318_v54 = vpop.f32.mrb[15].mxu1  ;;  %v3602_v44 = vadd.f32 %v2316_v2, %v4287_v57 }
 0x829   :  { %v3583_v63 = vadd.f32 %v2247_v58, %v4280_v32  ;;  %v3603_v5 = vadd.f32 %v2318_v54, %v4284_v50 }
 0x82a   :  { %v2900_v12 = vmul.f32 -1.442695, %v3582_v38 }
 0x82b   :  { %v2901_v39 = vmul.f32 -1.442695, %v3583_v63  ;;  %v2902_v28 = vmul.f32 -1.442695, %v3603_v5 }
 0x82c   :  { %3764 = vpow2.f32 %v2900_v12 }
 0x82d   :  { %3766 = vpow2.f32 %v2901_v39 }
 0x82e   :  { %3768 = vpow2.f32 %v2902_v28 }
 0x82f   :  { %3770 = vtanh.f32 %v3602_v44 }
 0x836   :  { %v3765_v7 = vpop.eup %3764 }
 0x837   :  { %v3767_v61 = vpop.eup %3766  ;;  %v2328_v48 = vadd.f32 1.0, %v3765_v7 }
 0x838   :  { %v2334_v16 = vadd.f32 1.0, %v3767_v61  ;;  %v3769_v36 = vpop.eup %3768 }
 0x839   :  { %3772 = vrcp.f32 %v2328_v48  ;;  %v3771_v29 = vpop.eup %3770  ;;  %v2341_v51 = vadd.f32 1.0, %v3769_v36 }
 0x83a   :  { %3774 = vrcp.f32 %v2334_v16 }
 0x83b   :  { %3776 = vrcp.f32 %v2341_v51 }
 0x843   :  { %v3773_v41 = vpop.eup %3772 }
 0x844   :  { %v3775_v4 = vpop.eup %3774  ;;  %v2345_v21 = vmul.f32 %v3773_v41, %v3771_v29 }
 0x845   :  { %v2344_v37 = vmul.f32 %v3775_v4, %v4895_v35  ;;  %v3777_v3 = vpop.eup %3776 }
 0x847   :  { %v5117_v49 = vadd.f32 %v2345_v21, %v2344_v37 }
 0x849   :  { %3778 = vtanh.f32 %v5117_v49 }
 0x853   :  { %v3779_v43 = vpop.eup %3778 }
 0x854   :  { %v2348_v11 = vmul.f32 %v3779_v43, %v3777_v3 }
 0x856   :  { %2903 = vst [vmem:[%s5174_s4 + $0x38] sm:$0xff] %v2348_v11  ;;  %2487 = vmatmul.mubr.f32.vlgmr.msra.gmra.mrb[16].mxu0 %v2348_v11  ;;  %2558 = vmatmul.mubr.f32.vlgmr.msra.gmra.mrb[16].mxu1 %v2348_v11 }
 0x857   :  { %3507 = vmatpush1.bf16.msra.mxu0 %v4807_v25  ;;  %3539 = vmatpush1.bf16.msra.mxu1 %v4926_v9 }
 0x858   :  { %3509 = vmatprep.subr.bf16.mxu0 %v4817_v26  ;;  %3541 = vmatprep.subr.bf16.mxu1 %v4936_v13 }
 0x859   :  { %2729 = vmatprep.mubr.f32.mxu0 %v3839_v0  ;;  %2800 = vmatprep.mubr.f32.mxu1 %v3839_v0 }
 0x85b   :  { %3511 = vmatpush1.bf16.msra.mxu0 %v4825_v60  ;;  %3543 = vmatpush1.bf16.msra.mxu1 %v4944_v52 }
 0x85c   :  { %3513 = vmatprep.subr.bf16.mxu0 %v4835_v1  ;;  %3545 = vmatprep.subr.bf16.mxu1 %v4954_v55 }
 0x85f   :  { %3515 = vmatpush1.bf16.msra.mxu0 %v4843_v59  ;;  %3547 = vmatpush1.bf16.msra.mxu1 %v4962_v19 }
 0x860   :  { %3517 = vmatprep.subr.bf16.mxu0 %v4853_v6  ;;  %3549 = vmatprep.subr.bf16.mxu1 %v4972_v24 }
 0x863   :  { %3519 = vmatpush1.bf16.msra.mxu0 %v4861_v8  ;;  %3551 = vmatpush1.bf16.msra.mxu1 %v4980_v18 }
 0x864   :  { %3521 = vmatprep.subr.bf16.mxu0 %v4871_v33  ;;  %3553 = vmatprep.subr.bf16.mxu1 %v4990_v23 }
 0x867   :  { %3523 = vmatpush1.bf16.msra.mxu0 %v4879_v62  ;;  %3555 = vmatpush1.bf16.msra.mxu1 %v4998_v46 }
 0x868   :  { %3525 = vmatprep.subr.bf16.mxu0 %v5011_v17  ;;  %3557 = vmatprep.subr.bf16.mxu1 %v5022_v53 }
 0x86b   :  { %3527 = vmatpush1.bf16.msra.mxu0 %v5024_v14  ;;  %3559 = vmatpush1.bf16.msra.mxu1 %v5036_v47 }
 0x86c   :  { %3529 = vmatprep.subr.bf16.mxu0 %v5049_v40  ;;  %3561 = vmatprep.subr.bf16.mxu1 %v5051_v56 }
 0x86f   :  { %3531 = vmatpush1.bf16.msra.mxu0 %v5063_v27  ;;  %3563 = vmatpush1.bf16.msra.mxu1 %v5076_v42 }
 0x870   :  { %3533 = vmatprep.subr.bf16.mxu0 %v5078_v22  ;;  %3565 = vmatprep.subr.bf16.mxu1 %v5089_v45 }
 0x873   :  { %3535 = vmatpush1.bf16.msra.mxu0 %v5101_v10  ;;  %3567 = vmatpush1.bf16.msra.mxu1 %v5105_v20 }
 0x929   :  { %v2488_v0 = vpop.f32.mrb[16].mxu0  ;;  %v2559_v25 = vpop.f32.mrb[16].mxu1 }
 0x92a   :  { %v3584_v26 = vadd.f32 %v2488_v0, %v4278_v31  ;;  %v2490_v60 = vpop.f32.mrb[17].mxu0  ;;  %v2561_v1 = vpop.f32.mrb[17].mxu1  ;;  %v3604_v35 = vadd.f32 %v2559_v25, %v4287_v57 }
 0x92b   :  { %v3585_v59 = vadd.f32 %v2490_v60, %v4280_v32  ;;  %v3605_v33 = vadd.f32 %v2561_v1, %v4284_v50 }
 0x92c   :  { %v2904_v6 = vmul.f32 -1.442695, %v3584_v26 }
 0x92d   :  { %v2905_v8 = vmul.f32 -1.442695, %v3585_v59  ;;  %v2906_v62 = vmul.f32 -1.442695, %v3605_v33 }
 0x92e   :  { %3780 = vpow2.f32 %v2904_v6 }
 0x92f   :  { %3782 = vpow2.f32 %v2905_v8 }
 0x930   :  { %3784 = vpow2.f32 %v2906_v62 }
 0x931   :  { %3786 = vtanh.f32 %v3604_v35 }
 0x938   :  { %v3781_v9 = vpop.eup %3780 }
 0x939   :  { %v3783_v13 = vpop.eup %3782  ;;  %v2571_v52 = vadd.f32 1.0, %v3781_v9 }
 0x93a   :  { %v2577_v55 = vadd.f32 1.0, %v3783_v13  ;;  %v3785_v19 = vpop.eup %3784 }
 0x93b   :  { %3788 = vrcp.f32 %v2571_v52  ;;  %v3787_v24 = vpop.eup %3786  ;;  %v2584_v17 = vadd.f32 1.0, %v3785_v19 }
 0x93c   :  { %3790 = vrcp.f32 %v2577_v55 }
 0x93d   :  { %3792 = vrcp.f32 %v2584_v17 }
 0x945   :  { %v3789_v18 = vpop.eup %3788 }
 0x946   :  { %v3791_v23 = vpop.eup %3790  ;;  %v2588_v46 = vmul.f32 %v3789_v18, %v3787_v24 }
 0x947   :  { %v2587_v53 = vmul.f32 %v3791_v23, %v5117_v49  ;;  %v3793_v47 = vpop.eup %3792 }
 0x949   :  { %v2589_v14 = vadd.f32 %v2588_v46, %v2587_v53 }
 0x94b   :  { %3794 = vtanh.f32 %v2589_v14 }
 0x955   :  { %v3795_v40 = vpop.eup %3794 }
 0x956   :  { %v2591_v56 = vmul.f32 %v3795_v40, %v3793_v47 }
 0x958   :  { %2907 = vst [vmem:[%s5174_s4 + $0x40] sm:$0xff] %v2591_v56  ;;  %2730 = vmatmul.mubr.f32.vlgmr.msra.gmra.mrb[18].mxu0 %v2591_v56  ;;  %2801 = vmatmul.mubr.f32.vlgmr.msra.gmra.mrb[18].mxu1 %v2591_v56 }
 0xa2b   :  { %v2731_v27 = vpop.f32.mrb[18].mxu0  ;;  %v2802_v42 = vpop.f32.mrb[18].mxu1 }
 0xa2c   :  { %v3586_v22 = vadd.f32 %v2731_v27, %v4278_v31  ;;  %v2733_v45 = vpop.f32.mrb[19].mxu0  ;;  %v2804_v15 = vpop.f32.mrb[19].mxu1  ;;  %v3606_v38 = vadd.f32 %v2802_v42, %v4287_v57 }
 0xa2d   :  { %v3587_v34 = vadd.f32 %v2733_v45, %v4280_v32  ;;  %v3607_v30 = vadd.f32 %v2804_v15, %v4284_v50 }
 0xa2e   :  { %v2908_v10 = vmul.f32 -1.442695, %v3586_v22 }
 0xa2f   :  { %v2909_v20 = vmul.f32 -1.442695, %v3587_v34  ;;  %v2910_v2 = vmul.f32 -1.442695, %v3607_v30 }
 0xa30   :  { %3796 = vpow2.f32 %v2908_v10 }
 0xa31   :  { %3798 = vpow2.f32 %v2909_v20 }
 0xa32   :  { %3800 = vpow2.f32 %v2910_v2 }
 0xa33   :  { %3802 = vtanh.f32 %v3606_v38 }
 0xa3a   :  { %v3797_v58 = vpop.eup %3796 }
 0xa3b   :  { %v3799_v54 = vpop.eup %3798  ;;  %v2814_v63 = vadd.f32 1.0, %v3797_v58 }
 0xa3c   :  { %v2820_v12 = vadd.f32 1.0, %v3799_v54  ;;  %v3801_v31 = vpop.eup %3800 }
 0xa3d   :  { %3804 = vrcp.f32 %v2814_v63  ;;  %v3803_v39 = vpop.eup %3802  ;;  %v2827_v44 = vadd.f32 1.0, %v3801_v31 }
 0xa3e   :  { %3806 = vrcp.f32 %v2820_v12 }
 0xa3f   :  { %3808 = vrcp.f32 %v2827_v44 }
 0xa47   :  { %v3805_v32 = vpop.eup %3804 }
 0xa48   :  { %v3807_v5 = vpop.eup %3806  ;;  %v2831_v28 = vmul.f32 %v3805_v32, %v3803_v39 }
 0xa49   :  { %v2830_v7 = vmul.f32 %v3807_v5, %v2589_v14  ;;  %v3809_v50 = vpop.eup %3808 }
 0xa4b   :  { %v2832_v61 = vadd.f32 %v2831_v28, %v2830_v7 }
 0xa4d   :  { %3810 = vtanh.f32 %v2832_v61 }
 0xa57   :  { %v3811_v57 = vpop.eup %3810 }
 0xa58   :  { %v2834_v48 = vmul.f32 %v3811_v57, %v3809_v50 }
 0xa5a   :  { %2911 = vst [vmem:[%s5174_s4 + $0x48] sm:$0xff] %v2834_v48 }
 0xa5b   :  { %2843 = vsyncpa [#allocation6], 1 }

</bundles_post_ra>
